<compile_context>
chip_gen: v7x
topology: tpu7x:2x2x1
jax: 0.10.0
libtpu: 0.0.40
codegen_flags: <defaults>
</compile_context>

<pallas_src>
import functools

import jax
import jax.numpy as jnp
from jax import lax
from jax.experimental import pallas as pl
from jax.experimental.pallas import tpu as pltpu


def _round_up(c, m=128):
    return ((c + m - 1) // m) * m


def _fold_bn(gamma, beta, mean, var, eps=1e-5):
    scale = gamma / jnp.sqrt(var + eps)
    bias = beta - mean * scale
    return scale, bias


def _pad_last(a, to):
    pad = [(0, 0)] * (a.ndim - 1) + [(0, to - a.shape[-1])]
    return jnp.pad(a, pad)


# ----------------------------------------------------------------------------
# kernel
# ----------------------------------------------------------------------------
def _bottleneck_kernel(x_top_ref, x_ref, x_bot_ref,
                       w1_ref, s1_ref, b1_ref,
                       wdw_ref, b2_ref,
                       w3_ref, s3_ref, b3_ref,
                       o_ref, pad_ref, *, stride, residual):
    h = pl.program_id(1)
    nh = pl.num_programs(1)

    TH, W, Cip = x_ref.shape[1], x_ref.shape[2], x_ref.shape[3]
    Cep = w1_ref.shape[1]
    Cop = w3_ref.shape[1]
    THo, Wo = o_ref.shape[1], o_ref.shape[2]
    THp2 = TH + 2

    # ---- conv1: 1x1 pointwise (MXU, bf16 x bf16 -> f32 acc) + BN + ReLU ----
    # Slab = [top halo row, strip, bottom halo row]; halo rows feed conv2.
    x_strip = x_ref[0]                                          # (TH, W, Cip) f32
    x_slab = jnp.concatenate([x_top_ref[0], x_strip, x_bot_ref[0]], axis=0)
    t1 = jnp.dot(x_slab.reshape(THp2 * W, Cip).astype(jnp.bfloat16),
                 w1_ref[...], preferred_element_type=jnp.float32)
    t1 = jnp.maximum(t1 * s1_ref[...] + b1_ref[...], 0.0)       # f32
    t1 = t1.reshape(THp2, W, Cep)

    # ---- stage conv1 output into the zero-bordered scratch slab ------------
    zero_col = jnp.zeros((THp2, 1, Cep), jnp.float32)
    pad_ref[:, 0:1, :] = zero_col                       # left zero-pad column
    pad_ref[:, W + 1:W + 2, :] = zero_col               # right zero-pad column
    pad_ref[:, 1:W + 1, :] = t1

    # Halo rows that fall outside the image are conv2's zero padding: zero
    # them only on the two boundary strips (cheap conditional, common path
    # does a single full-slab store above).
    @pl.when(h == 0)
    def _():
        pad_ref[0:1, :, :] = jnp.zeros((1, W + 2, Cep), jnp.float32)

    @pl.when(h == nh - 1)
    def _():
        pad_ref[THp2 - 1:THp2, :, :] = jnp.zeros((1, W + 2, Cep), jnp.float32)

    # ---- conv2: 3x3 depthwise (stride) + folded BN + ReLU (all f32) --------
    wdw = wdw_ref[...]                                   # (9, Cep), bn2 scale folded in
    if stride == 1:
        def tap(k):
            ky, kx = divmod(k, 3)
            return pad_ref[ky:ky + THo, kx:kx + Wo, :]   # static-slice ref read
    else:
        xp = pad_ref[...]                                # whole padded slab
        def tap(k):
            ky, kx = divmod(k, 3)
            return xp[ky:ky + (THo - 1) * stride + 1:stride,
                      kx:kx + (Wo - 1) * stride + 1:stride, :]

    acc = tap(0) * wdw[0]                                # init with first tap
    for k in range(1, 9):
        acc = acc + tap(k) * wdw[k]
    t2 = jnp.maximum(acc + b2_ref[...], 0.0)             # (THo, Wo, Cep) f32

    # ---- conv3: 1x1 pointwise (MXU) + folded BN (no ReLU yet) --------------
    t3 = jnp.dot(t2.reshape(THo * Wo, Cep).astype(jnp.bfloat16),
                 w3_ref[...], preferred_element_type=jnp.float32)
    t3 = t3 * s3_ref[...] + b3_ref[...]

    # ---- residual (f32) + final ReLU; lane-dense (Cop = 128*k) store -------
    if residual:
        t3 = t3 + x_strip.reshape(THo * Wo, Cip)
    o_ref[0] = jnp.maximum(t3, 0.0).reshape(THo, Wo, Cop)


# ----------------------------------------------------------------------------
# wrapper
# ----------------------------------------------------------------------------
def _pick_row_block(Ho, H, W, Cip, stride, row_block):
    """Output rows per grid strip (must divide Ho; strips must tile H evenly)."""
    if H != Ho * stride:                  # geometry does not tile evenly
        return Ho                         # -> single strip (whole image)
    if row_block is None:
        bytes_per_out_row = stride * W * Cip * 4
        row_block = max(8, (1 << 20) // max(1, bytes_per_out_row))
    row_block = max(1, min(row_block, Ho))
    divs = [d for d in range(1, Ho + 1) if Ho % d == 0 and d <= row_block]
    return max(divs)


def _forward_nhwc(x_nhwc, params, *, stride, row_block):
    N, H, W, Cin = x_nhwc.shape
    Ce = params["w1"].shape[0]
    Cout = params["w3"].shape[0]
    Ho = (H + 2 - 3) // stride + 1
    Wo = (W + 2 - 3) // stride + 1
    residual = (stride == 1) and (Cout == Cin)

    Cip, Cep, Cop = _round_up(Cin), _round_up(Ce), _round_up(Cout)

    # --- PyTorch weight layouts -> kernel layouts; fold BN; pad channels ----
    s1, b1 = _fold_bn(*params["bn1"])
    s2, b2 = _fold_bn(*params["bn2"])
    s3, b3 = _fold_bn(*params["bn3"])

    w1 = params["w1"].reshape(Ce, Cin).T                           # (Cin, Ce)
    w1 = jnp.pad(w1, ((0, Cip - Cin), (0, Cep - Ce))).astype(jnp.bfloat16)
    wdw = params["w2"].reshape(Ce, 9).T * s2[None, :]              # (9, Ce), s2 folded
    wdw = jnp.pad(wdw, ((0, 0), (0, Cep - Ce))).astype(jnp.float32)
    w3 = params["w3"].reshape(Cout, Ce).T                          # (Ce, Cout)
    w3 = jnp.pad(w3, ((0, Cep - Ce), (0, Cop - Cout))).astype(jnp.bfloat16)

    s1p = _pad_last(s1.reshape(1, Ce), Cep).astype(jnp.float32)
    b1p = _pad_last(b1.reshape(1, Ce), Cep).astype(jnp.float32)
    b2p = _pad_last(b2.reshape(1, 1, Ce), Cep).astype(jnp.float32)
    s3p = _pad_last(s3.reshape(1, Cout), Cop).astype(jnp.float32)
    b3p = _pad_last(b3.reshape(1, Cout), Cop).astype(jnp.float32)

    x_p = _pad_last(x_nhwc.astype(jnp.float32), Cip)               # (N, H, W, Cip)

    # --- row-strip tiling ----------------------------------------------------
    THo = _pick_row_block(Ho, H, W, Cip, stride, row_block)
    n_strips = Ho // THo
    TH = H // n_strips                    # input rows per strip (== THo*stride)

    kernel = functools.partial(_bottleneck_kernel, stride=stride,
                               residual=residual)

    def const(shape):
        return pl.BlockSpec(shape, lambda n, h: (0,) * len(shape))

    in_specs = [
        # top halo row (clamped index; zeroed in-kernel at image boundary)
        pl.BlockSpec((1, 1, W, Cip),
                     lambda n, h: (n, jnp.maximum(h * TH - 1, 0), 0, 0)),
        # the row strip itself
        pl.BlockSpec((1, TH, W, Cip), lambda n, h: (n, h, 0, 0)),
        # bottom halo row (clamped index; zeroed in-kernel at image boundary)
        pl.BlockSpec((1, 1, W, Cip),
                     lambda n, h: (n, jnp.minimum(h * TH + TH, H - 1), 0, 0)),
        const((Cip, Cep)), const((1, Cep)), const((1, Cep)),
        const((9, Cep)), const((1, 1, Cep)),
        const((Cep, Cop)), const((1, Cop)), const((1, Cop)),
    ]
    out_spec = pl.BlockSpec((1, THo, Wo, Cop), lambda n, h: (n, h, 0, 0))

    flops = 2 * N * (H * W * Cip * Cep + Ho * Wo * Cep * 9 + Ho * Wo * Cep * Cop)
    bytes_accessed = (4 * (N * H * W * Cip + N * Ho * Wo * Cop)
                      + 2 * (Cip * Cep + Cep * Cop) + 4 * (9 * Cep + 5 * Cep))

    out = pl.pallas_call(
        kernel,
        out_shape=jax.ShapeDtypeStruct((N, Ho, Wo, Cop), jnp.float32),
        grid=(N, n_strips),
        in_specs=in_specs,
        out_specs=out_spec,
        scratch_shapes=[pltpu.VMEM((TH + 2, W + 2, Cep), jnp.float32)],
        compiler_params=pltpu.CompilerParams(
            dimension_semantics=("parallel", "parallel"),
            vmem_limit_bytes=64 * 1024 * 1024),
        cost_estimate=pl.CostEstimate(flops=int(flops), transcendentals=0,
                                      bytes_accessed=int(bytes_accessed)),
    )(x_p, x_p, x_p, w1, s1p, b1p, wdw, b2p, w3, s3p, b3p)

    return out[..., :Cout]


@functools.partial(jax.jit, static_argnames=("stride", "row_block", "data_format"))
def bottleneck_block(x, params, *, stride=1, row_block=None, data_format="NCHW"):
    """FastSCNN BottleneckBlock forward.

    data_format="NCHW" matches the PyTorch module (transposes are fused under
    jit with the channel-padding copy); pass "NHWC" to skip the boundary
    transposes entirely.
    """
    if data_format == "NCHW":
        x = jnp.transpose(x, (0, 2, 3, 1))
    out = _forward_nhwc(x, params, stride=stride, row_block=row_block)
    if data_format == "NCHW":
        out = jnp.transpose(out, (0, 3, 1, 2))
    return out


# ----------------------------------------------------------------------------
# references & test
# ----------------------------------------------------------------------------
def _reference(x_nchw, params, *, stride=1, mxu_dtype=jnp.float32):
    """Pure-JAX NCHW reference (lax.conv).  mxu_dtype=jnp.bfloat16 mirrors the
    kernel's MXU operand precision for the two 1x1 convs (f32 accumulation)."""
    dn = ("NCHW", "OIHW", "NCHW")
    Ce = params["w1"].shape[0]

    def bn(t, p):
        s, b = _fold_bn(*p)
        return t * s.reshape(1, -1, 1, 1) + b.reshape(1, -1, 1, 1)

    def pw(t, w):
        return lax.conv_general_dilated(
            t.astype(mxu_dtype), w.astype(mxu_dtype), (1, 1), "VALID",
            dimension_numbers=dn, preferred_element_type=jnp.float32,
            precision=lax.Precision.HIGHEST)

    t = jax.nn.relu(bn(pw(x_nchw, params["w1"]), params["bn1"]))
    t = lax.conv_general_dilated(t, params["w2"], (stride, stride),
                                 ((1, 1), (1, 1)), dimension_numbers=dn,
                                 feature_group_count=Ce,
                                 preferred_element_type=jnp.float32,
                                 precision=lax.Precision.HIGHEST)
    t = jax.nn.relu(bn(t, params["bn2"]))
    t = bn(pw(t, params["w3"]), params["bn3"])
    if t.shape == x_nchw.shape:
        t = t + x_nchw
    return jax.nn.relu(t)


def _init_params(key, in_channels, out_channels, expansion=6):
    Ce = expansion * in_channels
    ks = jax.random.split(key, 9)
    mk_bn = lambda k, c: (1.0 + 0.1 * jax.random.normal(k, (c,)),
                          0.1 * jax.random.normal(jax.random.fold_in(k, 1), (c,)),
                          0.05 * jax.random.normal(jax.random.fold_in(k, 2), (c,)),
                          1.0 + 0.1 * jax.random.uniform(jax.random.fold_in(k, 3), (c,)))
    return {
        "w1": 0.2 * jax.random.normal(ks[0], (Ce, in_channels, 1, 1), jnp.float32),
        "bn1": mk_bn(ks[1], Ce),
        "w2": 0.2 * jax.random.normal(ks[2], (Ce, 1, 3, 3), jnp.float32),
        "bn2": mk_bn(ks[3], Ce),
        "w3": 0.2 * jax.random.normal(ks[4], (out_channels, Ce, 1, 1), jnp.float32),
        "bn3": mk_bn(ks[5], out_channels),
    }


if __name__ == "__main__":
    key = jax.random.PRNGKey(0)
    k1x, k1p, k2x, k2p = jax.random.split(key, 4)

    # --- case 1: stride=1, Cout==Cin -> residual path; 4 row strips ----------
    N, Cin, H, W, Cout, stride = 2, 4, 16, 16, 4, 1
    x = jax.random.normal(k1x, (N, Cin, H, W), jnp.float32)
    params = _init_params(k1p, Cin, Cout, expansion=6)

    out = jax.block_until_ready(
        bottleneck_block(x, params, stride=stride, row_block=4))
    ref_bf = _reference(x, params, stride=stride, mxu_dtype=jnp.bfloat16)
    ref_f32 = _reference(x, params, stride=stride, mxu_dtype=jnp.float32)
    assert out.shape == ref_f32.shape, (out.shape, ref_f32.shape)
    # matched-precision check (tight): only accumulation-order level noise
    assert jnp.allclose(out, ref_bf, atol=2e-2, rtol=2e-2), \
        float(jnp.max(jnp.abs(out - ref_bf)))
    # full-f32 check (loose): bounds the bf16 MXU-operand rounding
    assert jnp.allclose(out, ref_f32, atol=1e-1, rtol=1e-1), \
        float(jnp.max(jnp.abs(out - ref_f32)))

    # --- case 2: stride=2, Cout!=Cin -> downsampling, no residual ------------
    N2, Cin2, H2, W2, Cout2, stride2 = 1, 4, 16, 16, 8, 2
    x2 = jax.random.normal(k2x, (N2, Cin2, H2, W2), jnp.float32)
    params2 = _init_params(k2p, Cin2, Cout2, expansion=6)

    out2 = jax.block_until_ready(
        bottleneck_block(x2, params2, stride=stride2, row_block=4))
    ref2_bf = _reference(x2, params2, stride=stride2, mxu_dtype=jnp.bfloat16)
    ref2_f32 = _reference(x2, params2, stride=stride2, mxu_dtype=jnp.float32)
    assert out2.shape == ref2_f32.shape, (out2.shape, ref2_f32.shape)
    assert jnp.allclose(out2, ref2_bf, atol=2e-2, rtol=2e-2), \
        float(jnp.max(jnp.abs(out2 - ref2_bf)))
    assert jnp.allclose(out2, ref2_f32, atol=1e-1, rtol=1e-1), \
        float(jnp.max(jnp.abs(out2 - ref2_f32)))

    print("KERNEL_OK")
</pallas_src>

<mosaic_0001>
module attributes {stable_mosaic.version = 11 : i64} {
  func.func @_bottleneck_kernel(%arg0: i32, %arg1: i32, %arg2: memref<1x1x16x128xf32, #tpu.memory_space<vmem>>, %arg3: memref<1x4x16x128xf32, #tpu.memory_space<vmem>>, %arg4: memref<1x1x16x128xf32, #tpu.memory_space<vmem>>, %arg5: memref<128x128xbf16, #tpu.memory_space<vmem>>, %arg6: memref<1x128xf32, #tpu.memory_space<vmem>>, %arg7: memref<1x128xf32, #tpu.memory_space<vmem>>, %arg8: memref<9x128xf32, #tpu.memory_space<vmem>>, %arg9: memref<1x1x128xf32, #tpu.memory_space<vmem>>, %arg10: memref<128x128xbf16, #tpu.memory_space<vmem>>, %arg11: memref<1x128xf32, #tpu.memory_space<vmem>>, %arg12: memref<1x128xf32, #tpu.memory_space<vmem>>, %arg13: memref<1x4x16x128xf32, #tpu.memory_space<vmem>>, %arg14: memref<6x18x128xf32, #tpu.memory_space<vmem>>) attributes {dimension_semantics = [#tpu.dimension_semantics<parallel>, #tpu.dimension_semantics<parallel>], iteration_bounds = array<i64: 2, 4>, scalar_prefetch = 0 : i64, scratch_operands = 1 : i64, tpu.core_type = #tpu.core_type<tc>, window_params = [{transform_indices = @transform_0, window_bounds = array<i64: 1, 1, 16, 128>}, {transform_indices = @transform_1, window_bounds = array<i64: 1, 4, 16, 128>}, {transform_indices = @transform_2, window_bounds = array<i64: 1, 1, 16, 128>}, {pipeline_mode = #tpu.pipeline_mode<synchronous>, transform_indices = @transform_3, window_bounds = array<i64: 128, 128>}, {pipeline_mode = #tpu.pipeline_mode<synchronous>, transform_indices = @transform_4, window_bounds = array<i64: 1, 128>}, {pipeline_mode = #tpu.pipeline_mode<synchronous>, transform_indices = @transform_5, window_bounds = array<i64: 1, 128>}, {pipeline_mode = #tpu.pipeline_mode<synchronous>, transform_indices = @transform_6, window_bounds = array<i64: 9, 128>}, {pipeline_mode = #tpu.pipeline_mode<synchronous>, transform_indices = @transform_7, window_bounds = array<i64: 1, 1, 128>}, {pipeline_mode = #tpu.pipeline_mode<synchronous>, transform_indices = @transform_8, window_bounds = array<i64: 128, 128>}, {pipeline_mode = #tpu.pipeline_mode<synchronous>, transform_indices = @transform_9, window_bounds = array<i64: 1, 128>}, {pipeline_mode = #tpu.pipeline_mode<synchronous>, transform_indices = @transform_10, window_bounds = array<i64: 1, 128>}, {transform_indices = @transform_11, window_bounds = array<i64: 1, 4, 16, 128>}]} {
    %c0 = arith.constant 0 : index
    %c0_0 = arith.constant 0 : index
    %c0_1 = arith.constant 0 : index
    %c0_2 = arith.constant 0 : index
    %0 = vector.load %arg3[%c0, %c0_0, %c0_1, %c0_2] : memref<1x4x16x128xf32, #tpu.memory_space<vmem>>, vector<1x4x16x128xf32>
    %1 = vector.shape_cast %0 : vector<1x4x16x128xf32> to vector<4x16x128xf32>
    %c0_3 = arith.constant 0 : index
    %c0_4 = arith.constant 0 : index
    %c0_5 = arith.constant 0 : index
    %c0_6 = arith.constant 0 : index
    %2 = vector.load %arg2[%c0_3, %c0_4, %c0_5, %c0_6] : memref<1x1x16x128xf32, #tpu.memory_space<vmem>>, vector<1x1x16x128xf32>
    %3 = vector.shape_cast %2 : vector<1x1x16x128xf32> to vector<1x16x128xf32>
    %c0_7 = arith.constant 0 : index
    %c0_8 = arith.constant 0 : index
    %c0_9 = arith.constant 0 : index
    %c0_10 = arith.constant 0 : index
    %4 = vector.load %arg4[%c0_7, %c0_8, %c0_9, %c0_10] : memref<1x1x16x128xf32, #tpu.memory_space<vmem>>, vector<1x1x16x128xf32>
    %5 = vector.shape_cast %4 : vector<1x1x16x128xf32> to vector<1x16x128xf32>
    %6 = tpu.concatenate %3, %1, %5 in 0 : vector<1x16x128xf32>, vector<4x16x128xf32>, vector<1x16x128xf32> -> vector<6x16x128xf32>
    %7 = vector.shape_cast %6 : vector<6x16x128xf32> to vector<96x128xf32>
    %8 = arith.truncf %7 : vector<96x128xf32> to vector<96x128xbf16>
    %c0_11 = arith.constant 0 : index
    %c0_12 = arith.constant 0 : index
    %9 = vector.load %arg5[%c0_11, %c0_12] : memref<128x128xbf16, #tpu.memory_space<vmem>>, vector<128x128xbf16>
    %cst = arith.constant dense<0.000000e+00> : vector<96x128xf32>
    %10 = tpu.matmul %8, %9, %cst {dimension_numbers = #tpu.dot_dimension_numbers<[1], [0], [0], [1], [0, 0, 1, 1], [], []>} : vector<96x128xbf16>, vector<128x128xbf16>, vector<96x128xf32> -> vector<96x128xf32>
    %c0_13 = arith.constant 0 : index
    %c0_14 = arith.constant 0 : index
    %11 = vector.load %arg6[%c0_13, %c0_14] : memref<1x128xf32, #tpu.memory_space<vmem>>, vector<1x128xf32>
    %12 = vector.broadcast %11 : vector<1x128xf32> to vector<96x128xf32>
    %13 = arith.mulf %10, %12 : vector<96x128xf32>
    %c0_15 = arith.constant 0 : index
    %c0_16 = arith.constant 0 : index
    %14 = vector.load %arg7[%c0_15, %c0_16] : memref<1x128xf32, #tpu.memory_space<vmem>>, vector<1x128xf32>
    %15 = vector.broadcast %14 : vector<1x128xf32> to vector<96x128xf32>
    %16 = arith.addf %13, %15 : vector<96x128xf32>
    %cst_17 = arith.constant 0.000000e+00 : f32
    %17 = vector.broadcast %cst_17 : f32 to vector<96x128xf32>
    %18 = arith.maximumf %16, %17 : vector<96x128xf32>
    %19 = vector.shape_cast %18 : vector<96x128xf32> to vector<6x16x128xf32>
    %cst_18 = arith.constant 0.000000e+00 : f32
    %20 = vector.broadcast %cst_18 : f32 to vector<6x1x128xf32>
    %c0_19 = arith.constant 0 : index
    %c0_20 = arith.constant 0 : index
    %c0_21 = arith.constant 0 : index
    %21 = vector.load %arg14[%c0_19, %c0_20, %c0_21] : memref<6x18x128xf32, #tpu.memory_space<vmem>>, vector<6x1x128xf32>
    tpu.vector_store %arg14[%c0_19, %c0_20, %c0_21], %20 {strides = array<i32>} : memref<6x18x128xf32, #tpu.memory_space<vmem>>, vector<6x1x128xf32>,
    %c0_22 = arith.constant 0 : index
    %c17 = arith.constant 17 : index
    %c0_23 = arith.constant 0 : index
    %22 = vector.load %arg14[%c0_22, %c17, %c0_23] : memref<6x18x128xf32, #tpu.memory_space<vmem>>, vector<6x1x128xf32>
    tpu.vector_store %arg14[%c0_22, %c17, %c0_23], %20 {strides = array<i32>} : memref<6x18x128xf32, #tpu.memory_space<vmem>>, vector<6x1x128xf32>,
    %c0_24 = arith.constant 0 : index
    %c1 = arith.constant 1 : index
    %c0_25 = arith.constant 0 : index
    %23 = vector.load %arg14[%c0_24, %c1, %c0_25] : memref<6x18x128xf32, #tpu.memory_space<vmem>>, vector<6x16x128xf32>
    tpu.vector_store %arg14[%c0_24, %c1, %c0_25], %19 {strides = array<i32>} : memref<6x18x128xf32, #tpu.memory_space<vmem>>, vector<6x16x128xf32>,
    %c0_i32 = arith.constant 0 : i32
    %24 = arith.cmpi eq, %arg1, %c0_i32 : i32
    %25 = arith.extui %24 : i1 to i32
    %c0_i32_26 = arith.constant 0 : i32
    %26 = arith.cmpi ne, %25, %c0_i32_26 : i32
    scf.if %26 {
      %cst_72 = arith.constant 0.000000e+00 : f32
      %116 = vector.broadcast %cst_72 : f32 to vector<1x18x128xf32>
      %c0_73 = arith.constant 0 : index
      %c0_74 = arith.constant 0 : index
      %c0_75 = arith.constant 0 : index
      %117 = vector.load %arg14[%c0_73, %c0_74, %c0_75] : memref<6x18x128xf32, #tpu.memory_space<vmem>>, vector<1x18x128xf32>
      tpu.vector_store %arg14[%c0_73, %c0_74, %c0_75], %116 {strides = array<i32>} : memref<6x18x128xf32, #tpu.memory_space<vmem>>, vector<1x18x128xf32>,
    } else {
    }
    %c3_i32 = arith.constant 3 : i32
    %27 = arith.cmpi eq, %arg1, %c3_i32 : i32
    %28 = arith.extui %27 : i1 to i32
    %c0_i32_27 = arith.constant 0 : i32
    %29 = arith.cmpi ne, %28, %c0_i32_27 : i32
    scf.if %29 {
      %cst_72 = arith.constant 0.000000e+00 : f32
      %116 = vector.broadcast %cst_72 : f32 to vector<1x18x128xf32>
      %c5 = arith.constant 5 : index
      %c0_73 = arith.constant 0 : index
      %c0_74 = arith.constant 0 : index
      %117 = vector.load %arg14[%c5, %c0_73, %c0_74] : memref<6x18x128xf32, #tpu.memory_space<vmem>>, vector<1x18x128xf32>
      tpu.vector_store %arg14[%c5, %c0_73, %c0_74], %116 {strides = array<i32>} : memref<6x18x128xf32, #tpu.memory_space<vmem>>, vector<1x18x128xf32>,
    } else {
    }
    %c0_28 = arith.constant 0 : index
    %c0_29 = arith.constant 0 : index
    %30 = vector.load %arg8[%c0_28, %c0_29] : memref<9x128xf32, #tpu.memory_space<vmem>>, vector<9x128xf32>
    %c0_30 = arith.constant 0 : index
    %c0_31 = arith.constant 0 : index
    %c0_32 = arith.constant 0 : index
    %31 = vector.load %arg14[%c0_30, %c0_31, %c0_32] : memref<6x18x128xf32, #tpu.memory_space<vmem>>, vector<4x16x128xf32>
    %32 = vector.extract_strided_slice %30 {offsets = [0, 0], sizes = [1, 128], strides = [1, 1]} : vector<9x128xf32> to vector<1x128xf32>
    %33 = vector.shape_cast %32 : vector<1x128xf32> to vector<128xf32>
    %34 = vector.shape_cast %33 : vector<128xf32> to vector<1x1x128xf32>
    %35 = vector.broadcast %34 : vector<1x1x128xf32> to vector<4x16x128xf32>
    %36 = arith.mulf %31, %35 : vector<4x16x128xf32>
    %c0_33 = arith.constant 0 : index
    %c1_34 = arith.constant 1 : index
    %c0_35 = arith.constant 0 : index
    %37 = vector.load %arg14[%c0_33, %c1_34, %c0_35] : memref<6x18x128xf32, #tpu.memory_space<vmem>>, vector<4x16x128xf32>
    %38 = vector.extract_strided_slice %30 {offsets = [1, 0], sizes = [1, 128], strides = [1, 1]} : vector<9x128xf32> to vector<1x128xf32>
    %39 = vector.shape_cast %38 : vector<1x128xf32> to vector<128xf32>
    %40 = vector.shape_cast %39 : vector<128xf32> to vector<1x1x128xf32>
    %41 = vector.broadcast %40 : vector<1x1x128xf32> to vector<4x16x128xf32>
    %42 = arith.mulf %37, %41 : vector<4x16x128xf32>
    %43 = arith.addf %36, %42 : vector<4x16x128xf32>
    %c0_36 = arith.constant 0 : index
    %c2 = arith.constant 2 : index
    %c0_37 = arith.constant 0 : index
    %44 = vector.load %arg14[%c0_36, %c2, %c0_37] : memref<6x18x128xf32, #tpu.memory_space<vmem>>, vector<4x16x128xf32>
    %45 = vector.extract_strided_slice %30 {offsets = [2, 0], sizes = [1, 128], strides = [1, 1]} : vector<9x128xf32> to vector<1x128xf32>
    %46 = vector.shape_cast %45 : vector<1x128xf32> to vector<128xf32>
    %47 = vector.shape_cast %46 : vector<128xf32> to vector<1x1x128xf32>
    %48 = vector.broadcast %47 : vector<1x1x128xf32> to vector<4x16x128xf32>
    %49 = arith.mulf %44, %48 : vector<4x16x128xf32>
    %50 = arith.addf %43, %49 : vector<4x16x128xf32>
    %c1_38 = arith.constant 1 : index
    %c0_39 = arith.constant 0 : index
    %c0_40 = arith.constant 0 : index
    %51 = vector.load %arg14[%c1_38, %c0_39, %c0_40] : memref<6x18x128xf32, #tpu.memory_space<vmem>>, vector<4x16x128xf32>
    %52 = vector.extract_strided_slice %30 {offsets = [3, 0], sizes = [1, 128], strides = [1, 1]} : vector<9x128xf32> to vector<1x128xf32>
    %53 = vector.shape_cast %52 : vector<1x128xf32> to vector<128xf32>
    %54 = vector.shape_cast %53 : vector<128xf32> to vector<1x1x128xf32>
    %55 = vector.broadcast %54 : vector<1x1x128xf32> to vector<4x16x128xf32>
    %56 = arith.mulf %51, %55 : vector<4x16x128xf32>
    %57 = arith.addf %50, %56 : vector<4x16x128xf32>
    %c1_41 = arith.constant 1 : index
    %c1_42 = arith.constant 1 : index
    %c0_43 = arith.constant 0 : index
    %58 = vector.load %arg14[%c1_41, %c1_42, %c0_43] : memref<6x18x128xf32, #tpu.memory_space<vmem>>, vector<4x16x128xf32>
    %59 = vector.extract_strided_slice %30 {offsets = [4, 0], sizes = [1, 128], strides = [1, 1]} : vector<9x128xf32> to vector<1x128xf32>
    %60 = vector.shape_cast %59 : vector<1x128xf32> to vector<128xf32>
    %61 = vector.shape_cast %60 : vector<128xf32> to vector<1x1x128xf32>
    %62 = vector.broadcast %61 : vector<1x1x128xf32> to vector<4x16x128xf32>
    %63 = arith.mulf %58, %62 : vector<4x16x128xf32>
    %64 = arith.addf %57, %63 : vector<4x16x128xf32>
    %c1_44 = arith.constant 1 : index
    %c2_45 = arith.constant 2 : index
    %c0_46 = arith.constant 0 : index
    %65 = vector.load %arg14[%c1_44, %c2_45, %c0_46] : memref<6x18x128xf32, #tpu.memory_space<vmem>>, vector<4x16x128xf32>
    %66 = vector.extract_strided_slice %30 {offsets = [5, 0], sizes = [1, 128], strides = [1, 1]} : vector<9x128xf32> to vector<1x128xf32>
    %67 = vector.shape_cast %66 : vector<1x128xf32> to vector<128xf32>
    %68 = vector.shape_cast %67 : vector<128xf32> to vector<1x1x128xf32>
    %69 = vector.broadcast %68 : vector<1x1x128xf32> to vector<4x16x128xf32>
    %70 = arith.mulf %65, %69 : vector<4x16x128xf32>
    %71 = arith.addf %64, %70 : vector<4x16x128xf32>
    %c2_47 = arith.constant 2 : index
    %c0_48 = arith.constant 0 : index
    %c0_49 = arith.constant 0 : index
    %72 = vector.load %arg14[%c2_47, %c0_48, %c0_49] : memref<6x18x128xf32, #tpu.memory_space<vmem>>, vector<4x16x128xf32>
    %73 = vector.extract_strided_slice %30 {offsets = [6, 0], sizes = [1, 128], strides = [1, 1]} : vector<9x128xf32> to vector<1x128xf32>
    %74 = vector.shape_cast %73 : vector<1x128xf32> to vector<128xf32>
    %75 = vector.shape_cast %74 : vector<128xf32> to vector<1x1x128xf32>
    %76 = vector.broadcast %75 : vector<1x1x128xf32> to vector<4x16x128xf32>
    %77 = arith.mulf %72, %76 : vector<4x16x128xf32>
    %78 = arith.addf %71, %77 : vector<4x16x128xf32>
    %c2_50 = arith.constant 2 : index
    %c1_51 = arith.constant 1 : index
    %c0_52 = arith.constant 0 : index
    %79 = vector.load %arg14[%c2_50, %c1_51, %c0_52] : memref<6x18x128xf32, #tpu.memory_space<vmem>>, vector<4x16x128xf32>
    %80 = vector.extract_strided_slice %30 {offsets = [7, 0], sizes = [1, 128], strides = [1, 1]} : vector<9x128xf32> to vector<1x128xf32>
    %81 = vector.shape_cast %80 : vector<1x128xf32> to vector<128xf32>
    %82 = vector.shape_cast %81 : vector<128xf32> to vector<1x1x128xf32>
    %83 = vector.broadcast %82 : vector<1x1x128xf32> to vector<4x16x128xf32>
    %84 = arith.mulf %79, %83 : vector<4x16x128xf32>
    %85 = arith.addf %78, %84 : vector<4x16x128xf32>
    %c2_53 = arith.constant 2 : index
    %c2_54 = arith.constant 2 : index
    %c0_55 = arith.constant 0 : index
    %86 = vector.load %arg14[%c2_53, %c2_54, %c0_55] : memref<6x18x128xf32, #tpu.memory_space<vmem>>, vector<4x16x128xf32>
    %87 = vector.extract_strided_slice %30 {offsets = [8, 0], sizes = [1, 128], strides = [1, 1]} : vector<9x128xf32> to vector<1x128xf32>
    %88 = vector.shape_cast %87 : vector<1x128xf32> to vector<128xf32>
    %89 = vector.shape_cast %88 : vector<128xf32> to vector<1x1x128xf32>
    %90 = vector.broadcast %89 : vector<1x1x128xf32> to vector<4x16x128xf32>
    %91 = arith.mulf %86, %90 : vector<4x16x128xf32>
    %92 = arith.addf %85, %91 : vector<4x16x128xf32>
    %c0_56 = arith.constant 0 : index
    %c0_57 = arith.constant 0 : index
    %c0_58 = arith.constant 0 : index
    %93 = vector.load %arg9[%c0_56, %c0_57, %c0_58] : memref<1x1x128xf32, #tpu.memory_space<vmem>>, vector<1x1x128xf32>
    %94 = vector.broadcast %93 : vector<1x1x128xf32> to vector<4x16x128xf32>
    %95 = arith.addf %92, %94 : vector<4x16x128xf32>
    %cst_59 = arith.constant 0.000000e+00 : f32
    %96 = vector.broadcast %cst_59 : f32 to vector<4x16x128xf32>
    %97 = arith.maximumf %95, %96 : vector<4x16x128xf32>
    %98 = vector.shape_cast %97 : vector<4x16x128xf32> to vector<64x128xf32>
    %99 = arith.truncf %98 : vector<64x128xf32> to vector<64x128xbf16>
    %c0_60 = arith.constant 0 : index
    %c0_61 = arith.constant 0 : index
    %100 = vector.load %arg10[%c0_60, %c0_61] : memref<128x128xbf16, #tpu.memory_space<vmem>>, vector<128x128xbf16>
    %cst_62 = arith.constant dense<0.000000e+00> : vector<64x128xf32>
    %101 = tpu.matmul %99, %100, %cst_62 {dimension_numbers = #tpu.dot_dimension_numbers<[1], [0], [0], [1], [0, 0, 1, 1], [], []>} : vector<64x128xbf16>, vector<128x128xbf16>, vector<64x128xf32> -> vector<64x128xf32>
    %c0_63 = arith.constant 0 : index
    %c0_64 = arith.constant 0 : index
    %102 = vector.load %arg11[%c0_63, %c0_64] : memref<1x128xf32, #tpu.memory_space<vmem>>, vector<1x128xf32>
    %103 = vector.broadcast %102 : vector<1x128xf32> to vector<64x128xf32>
    %104 = arith.mulf %101, %103 : vector<64x128xf32>
    %c0_65 = arith.constant 0 : index
    %c0_66 = arith.constant 0 : index
    %105 = vector.load %arg12[%c0_65, %c0_66] : memref<1x128xf32, #tpu.memory_space<vmem>>, vector<1x128xf32>
    %106 = vector.broadcast %105 : vector<1x128xf32> to vector<64x128xf32>
    %107 = arith.addf %104, %106 : vector<64x128xf32>
    %108 = vector.shape_cast %1 : vector<4x16x128xf32> to vector<64x128xf32>
    %109 = arith.addf %107, %108 : vector<64x128xf32>
    %cst_67 = arith.constant 0.000000e+00 : f32
    %110 = vector.broadcast %cst_67 : f32 to vector<64x128xf32>
    %111 = arith.maximumf %109, %110 : vector<64x128xf32>
    %112 = vector.shape_cast %111 : vector<64x128xf32> to vector<4x16x128xf32>
    %c0_68 = arith.constant 0 : index
    %c0_69 = arith.constant 0 : index
    %c0_70 = arith.constant 0 : index
    %c0_71 = arith.constant 0 : index
    %113 = vector.load %arg13[%c0_68, %c0_69, %c0_70, %c0_71] : memref<1x4x16x128xf32, #tpu.memory_space<vmem>>, vector<1x4x16x128xf32>
    %114 = vector.shape_cast %113 : vector<1x4x16x128xf32> to vector<4x16x128xf32>
    %115 = vector.shape_cast %112 : vector<4x16x128xf32> to vector<1x4x16x128xf32>
    tpu.vector_store %arg13[%c0_68, %c0_69, %c0_70, %c0_71], %115 {strides = array<i32>} : memref<1x4x16x128xf32, #tpu.memory_space<vmem>>, vector<1x4x16x128xf32>,
    return
  }
  func.func @transform_0(%arg0: i32, %arg1: i32) -> (i32, i32, i32, i32) {
    %c4_i32 = arith.constant 4 : i32
    %0 = arith.muli %arg1, %c4_i32 : i32
    %c1_i32 = arith.constant 1 : i32
    %1 = arith.subi %0, %c1_i32 : i32
    %c0_i32 = arith.constant 0 : i32
    %2 = arith.maxsi %1, %c0_i32 : i32
    %c0_i32_0 = arith.constant 0 : i32
    %c0_i32_1 = arith.constant 0 : i32
    %c0_i32_2 = arith.constant 0 : i32
    return %arg0, %2, %c0_i32_0, %c0_i32_1 : i32, i32, i32, i32
  }
  func.func @transform_1(%arg0: i32, %arg1: i32) -> (i32, i32, i32, i32) {
    %c0_i32 = arith.constant 0 : i32
    %c0_i32_0 = arith.constant 0 : i32
    %c0_i32_1 = arith.constant 0 : i32
    return %arg0, %arg1, %c0_i32, %c0_i32_0 : i32, i32, i32, i32
  }
  func.func @transform_2(%arg0: i32, %arg1: i32) -> (i32, i32, i32, i32) {
    %c4_i32 = arith.constant 4 : i32
    %0 = arith.muli %arg1, %c4_i32 : i32
    %c4_i32_0 = arith.constant 4 : i32
    %1 = arith.addi %0, %c4_i32_0 : i32
    %c15_i32 = arith.constant 15 : i32
    %2 = arith.minsi %1, %c15_i32 : i32
    %c0_i32 = arith.constant 0 : i32
    %c0_i32_1 = arith.constant 0 : i32
    %c0_i32_2 = arith.constant 0 : i32
    return %arg0, %2, %c0_i32, %c0_i32_1 : i32, i32, i32, i32
  }
  func.func @transform_3(%arg0: i32, %arg1: i32) -> (i32, i32) {
    %c0_i32 = arith.constant 0 : i32
    %c0_i32_0 = arith.constant 0 : i32
    %c0_i32_1 = arith.constant 0 : i32
    return %c0_i32, %c0_i32_0 : i32, i32
  }
  func.func @transform_4(%arg0: i32, %arg1: i32) -> (i32, i32) {
    %c0_i32 = arith.constant 0 : i32
    %c0_i32_0 = arith.constant 0 : i32
    %c0_i32_1 = arith.constant 0 : i32
    return %c0_i32, %c0_i32_0 : i32, i32
  }
  func.func @transform_5(%arg0: i32, %arg1: i32) -> (i32, i32) {
    %c0_i32 = arith.constant 0 : i32
    %c0_i32_0 = arith.constant 0 : i32
    %c0_i32_1 = arith.constant 0 : i32
    return %c0_i32, %c0_i32_0 : i32, i32
  }
  func.func @transform_6(%arg0: i32, %arg1: i32) -> (i32, i32) {
    %c0_i32 = arith.constant 0 : i32
    %c0_i32_0 = arith.constant 0 : i32
    %c0_i32_1 = arith.constant 0 : i32
    return %c0_i32, %c0_i32_0 : i32, i32
  }
  func.func @transform_7(%arg0: i32, %arg1: i32) -> (i32, i32, i32) {
    %c0_i32 = arith.constant 0 : i32
    %c0_i32_0 = arith.constant 0 : i32
    %c0_i32_1 = arith.constant 0 : i32
    %c0_i32_2 = arith.constant 0 : i32
    return %c0_i32, %c0_i32_0, %c0_i32_1 : i32, i32, i32
  }
  func.func @transform_8(%arg0: i32, %arg1: i32) -> (i32, i32) {
    %c0_i32 = arith.constant 0 : i32
    %c0_i32_0 = arith.constant 0 : i32
    %c0_i32_1 = arith.constant 0 : i32
    return %c0_i32, %c0_i32_0 : i32, i32
  }
  func.func @transform_9(%arg0: i32, %arg1: i32) -> (i32, i32) {
    %c0_i32 = arith.constant 0 : i32
    %c0_i32_0 = arith.constant 0 : i32
    %c0_i32_1 = arith.constant 0 : i32
    return %c0_i32, %c0_i32_0 : i32, i32
  }
  func.func @transform_10(%arg0: i32, %arg1: i32) -> (i32, i32) {
    %c0_i32 = arith.constant 0 : i32
    %c0_i32_0 = arith.constant 0 : i32
    %c0_i32_1 = arith.constant 0 : i32
    return %c0_i32, %c0_i32_0 : i32, i32
  }
  func.func @transform_11(%arg0: i32, %arg1: i32) -> (i32, i32, i32, i32) {
    %c0_i32 = arith.constant 0 : i32
    %c0_i32_0 = arith.constant 0 : i32
    %c0_i32_1 = arith.constant 0 : i32
    return %arg0, %arg1, %c0_i32, %c0_i32_0 : i32, i32, i32, i32
  }
}

</mosaic_0001>

<bundles_post_ra>
// kernel: bottleneck_block.1
= control target key start
LH: loop header
LB: loop body
LE: loop exit
PB: predicated region body
PF: predicated region fallthrough
CT: control target
= control target key end

     0   :  { %s3431_s0 = inlined_call_operand.hbm [shape: f32[2,16,16,128], index: 0, kind: input, shape index: {}, may-alias: {0,1,2}]   ;;  %s3432_s1 = inlined_call_operand.hbm [shape: f32[2,16,16,128], index: 1, kind: input, shape index: {}, may-alias: {0,1,2}]   ;;  %s3433_s2 = inlined_call_operand.hbm [shape: f32[2,16,16,128], index: 2, kind: input, shape index: {}, may-alias: {0,1,2}]   ;;  %s3434_s3 = inlined_call_operand.hbm [shape: bf16[128,128], index: 3, kind: input, shape index: {}]   ;;  %s3435_s4 = inlined_call_operand.hbm [shape: f32[1,128], index: 4, kind: input, shape index: {}]   ;;  %s3436_s5 = inlined_call_operand.hbm [shape: f32[1,128], index: 5, kind: input, shape index: {}]   ;;  %s3437_s6 = inlined_call_operand.hbm [shape: f32[9,128], index: 6, kind: input, shape index: {}]   ;;  %s3438_s7 = inlined_call_operand.hbm [shape: f32[1,1,128], index: 7, kind: input, shape index: {}]   ;;  %s3439_s8 = inlined_call_operand.hbm [shape: bf16[128,128], index: 8, kind: input, shape index: {}]   ;;  %s3440_s9 = inlined_call_operand.hbm [shape: f32[1,128], index: 9, kind: input, shape index: {}]   ;;  %s3441_s10 = inlined_call_operand.hbm [shape: f32[1,128], index: 10, kind: input, shape index: {}]   ;;  %s3442_s11 = inlined_call_operand.hbm [shape: f32[2,16,16,128], index: 11, kind: output, shape index: {}]  }
   0x1   :  { %3478 = sst [smem:[#allocation47_spill]] %s3431_s0 }
   0x2   :  { %3479 = sst [smem:[#allocation48_spill]] %s3432_s1 }
   0x3   :  { %3480 = sst [smem:[#allocation49_spill]] %s3433_s2 }
   0x4   :  { %3481 = sst [smem:[#allocation50_spill]] %s3434_s3 }
   0x5   :  { %3482 = sst [smem:[#allocation51_spill]] %s3435_s4 }
   0x6   :  { %3483 = sst [smem:[#allocation52_spill]] %s3436_s5 }
   0x7   :  { %3484 = sst [smem:[#allocation53_spill]] %s3437_s6 }
   0x8   :  { %3485 = sst [smem:[#allocation54_spill]] %s3438_s7 }
   0x9   :  { %3486 = sst [smem:[#allocation55_spill]] %s3439_s8 }
   0xa   :  { %3487 = sst [smem:[#allocation56_spill]] %s3440_s9 }
   0xb   :  { %3488 = sst [smem:[#allocation57_spill]] %s3441_s10 }
   0xc   :  { %3489 = sst [smem:[#allocation58_spill]] %s3442_s11 }
   0xd   :  { %16 = vsyncpa [#allocation4], 0 }
   0xe   :  { %18 = vsyncpa [#allocation4 + $0x1], 0 }
   0xf   :  { %19 = vsyncpa [#allocation7], 0 }
  0x10   :  { %21 = vsyncpa [#allocation7 + $0x1], 0 }
  0x11   :  { %22 = vsyncpa [#allocation10], 0 }
  0x12   :  { %23 = vsyncpa [#allocation13], 0 }
  0x13   :  { %24 = vsyncpa [#allocation16], 0 }
  0x14   :  { %25 = vsyncpa [#allocation19], 0 }
  0x15   :  { %26 = vsyncpa [#allocation5], 0 }
  0x16   :  { %28 = vsyncpa [#allocation5 + $0x1], 0  ;;  %s2559_s17 = smov 0   ;;  %s2561_s18 = smov 0  }
  0x17   :  { %s2563_s19 = smov 0   ;;  %s2565_s20 = smov 0  }
  0x18   :  { %s2567_s21 = smov 0   ;;  %s2569_s22 = smov 0  }
  0x19   :  { %s2571_s23 = smov 0   ;;  %s2573_s24 = smov 0  }
  0x1a   :  { %s2575_s25 = smov 0   ;;  %s2577_s26 = smov 0  }
  0x1b   :  { %s2579_s27 = smov 0   ;;  %s2581_s28 = smov 0  }
  0x1c   :  { %s2583_s29 = smov 0   ;;  %s2585_s30 = smov 0  }
  0x1d LB: > { %3490 = sst [smem:[#allocation30_spill]] %s2424_s17  ;;  %s2630_s12 = sadd.s32 4294967295, %s2476_s30   ;;  %s2476_s30 = sphi %s2585_s30, %s34_s30   ;;  %s2472_s29 = sphi %s2583_s29, %s3590_s29   ;;  %s2468_s28 = sphi %s2581_s28, %s3589_s28   ;;  %s2464_s27 = sphi %s2579_s27, %s3597_s27   ;;  %s2460_s26 = sphi %s2577_s26, %s3587_s26   ;;  %s2456_s25 = sphi %s2575_s25, %s3596_s25   ;;  %s2452_s24 = sphi %s2573_s24, %s3595_s24   ;;  %s2448_s23 = sphi %s2571_s23, %s3584_s23   ;;  %s2444_s22 = sphi %s2569_s22, %s3594_s22   ;;  %s2440_s21 = sphi %s2567_s21, %s3593_s21   ;;  %s2436_s20 = sphi %s2565_s20, %s3592_s20   ;;  %s2432_s19 = sphi %s2563_s19, %s3591_s19   ;;  %s2428_s18 = sphi %s2561_s18, %s3583_s18   ;;  %s2424_s17 = sphi %s2559_s17, %s3582_s17  }
  0x1e   : > { %3491 = sst [smem:[#allocation31_spill]] %s2428_s18  ;;  %p1600_p0 = scmp.ge.s32.totalorder %s2476_s30, 1 }
  0x1f   : > { %3492 = sst [smem:[#allocation32_spill]] %s2432_s19  ;;  %p3452_p1 = scmp.eq.s32.totalorder %s2630_s12, 0 }
  0x20   : > { %3493 = sst [smem:[#allocation33_spill]] %s2436_s20  ;;  %p347_p2 = scmp.lt.s32.totalorder %s2476_s30, 9 }
  0x21   : > { %3494 = sst [smem:[#allocation34_spill]] %s2448_s23  ;;  %s2478_s14 = smov [#allocation9]  }
  0x22   : > { %3495 = sst [smem:[#allocation35_spill]] %s2452_s24  ;;  %p2635_p3 = pnand %p1600_p0, %p347_p2 }
  0x23   : > { %3496 = sst [smem:[#allocation36_spill]] %s2456_s25  ;;  %s359_s15 = sshll.u32 %s2478_s14, 4  ;;  %s2639_s15 = int_to_ptr.vmem [resolvable:$true] %s359_s15 }
  0x24   : > { %3497 = sst [smem:[#allocation37_spill]] %s2460_s26  ;;  %p1790_p4 = pneg %p2635_p3 }
  0x25   : > { %3498 = sst [smem:[#allocation38_spill]] %s2464_s27  ;;  %s2479_s11 = smov [#allocation12]  }
  0x26   : > { %3499 = sst [smem:[#allocation39_spill]] %s2468_s28  ;;  %p2645_p5 = pnand %p1790_p4, %p3452_p1 }
  0x27   : > { %3500 = sst [smem:[#allocation40_spill]] %s2472_s29  ;;  %s384_s27 = sshll.u32 %s2479_s11, 4  ;;  %s2649_s27 = int_to_ptr.vmem [resolvable:$true] %s384_s27 }
  0x28   : > { %s3501_s13 = scalar_select %p2635_p3, 1, 0 }
  0x29   : > { %s3503_s16 = scalar_select %p2645_p5, 1, 0 }
  0x2a   : > { %3502 = sst [smem:[#allocation41_spill]] %s3501_s13  ;;  %s2480_s26 = smov [#allocation15]  }
  0x2b   : > { %s2651_s2 = sshll.u32 %s2480_s26, 4  ;;  %s3504_s3 = sld [smem:[#allocation50_spill]]  ;;  %s409_s2 = int_to_ptr.vmem [resolvable:$true] %s2651_s2 }
  0x2c   : > { %p2661_p7 = pneg %p2645_p5 }
  0x31   : > { %s1992_s14 = scalar_lea.hbm %s3504_s3, 1024 }
  0x32   : > { %p1993_p6 = scmp.ne.s32.totalorder %s3504_s3, %s1992_s14  ;;  %p1999_p10 = scmp.lt.u32.totalorder %s1992_s14, %s3504_s3 }
  0x34   : > { %p1995_p8 = pnand %p2661_p7, %p1993_p6 }
  0x36   : > { %p1996_p9 = pneg %p1995_p8 }
  0x38   : > { %p2001_p11 = pnand %p1999_p10, %p1996_p9 }
  0x3a   : > { %2004 = shalt.err (!%p2001_p11)
}
  0x3b   : > { %s2005_s17 = scalar_lea.vmem %s2639_s15, 1024  ;;  %p2013_p2 = scmp.lt.s32.totalorder %s2639_s15, %s2639_s15 }
  0x3c   : > { %p2006_p12 = scmp.ne.s32.totalorder %s2639_s15, %s2005_s17  ;;  %p2014_p4 = scmp.lt.s32.totalorder %s2005_s17, %s2005_s17 }
  0x3e   : > { %p2008_p13 = pnand %p2006_p12, %p2661_p7  ;;  %p2015_p6 = por %p2014_p4, %p2013_p2 }
  0x40   : > { %p2009_p0 = pneg %p2008_p13 }
  0x42   : > { %p2016_p8 = pnand %p2015_p6, %p2009_p0 }
  0x44   : > { %2019 = shalt.err (!%p2016_p8)
}
  0x45   : > { %s3454_s18 = smov 64   ;;  %s3455_s19 = smov 4  }
  0x46   : > { %1793 = dma.hbm_to_vmem [thread:$0]  (!%p2645_p5), %s3504_s3, 1024, %s2639_s15, [#allocation10], %s3454_s18, %s3454_s18, %s3455_s19  }
  0x47   : > { %s3506_s5 = sld [smem:[#allocation52_spill]] }
  0x4d   : > { %s2020_s17 = scalar_lea.hbm %s3506_s5, 16 }
  0x4e   : > { %p2021_p9 = scmp.ne.s32.totalorder %s3506_s5, %s2020_s17  ;;  %p2027_p12 = scmp.lt.u32.totalorder %s2020_s17, %s3506_s5 }
  0x50   : > { %p2023_p10 = pnand %p2021_p9, %p2661_p7 }
  0x52   : > { %p2024_p11 = pneg %p2023_p10 }
  0x54   : > { %p2029_p13 = pnand %p2027_p12, %p2024_p11 }
  0x56   : > { %2032 = shalt.err (!%p2029_p13)
}
  0x57   : > { %s2033_s15 = scalar_lea.vmem %s2649_s27, 16  ;;  %s2040_s23 = scalar_lea.vmem %s2649_s27, 32 }
  0x58   : > { %p2034_p0 = scmp.ne.s32.totalorder %s2649_s27, %s2033_s15  ;;  %p2041_p6 = scmp.lt.s32.totalorder %s2649_s27, %s2649_s27 }
  0x59   : > { %p2042_p8 = scmp.lt.s32.totalorder %s2040_s23, %s2033_s15 }
  0x5a   : > { %p2036_p2 = pnand %p2034_p0, %p2661_p7 }
  0x5b   : > { %p2043_p9 = por %p2042_p8, %p2041_p6 }
  0x5c   : > { %p2037_p4 = pneg %p2036_p2 }
  0x5e   : > { %p2044_p10 = pnand %p2043_p9, %p2037_p4 }
  0x60   : > { %2047 = shalt.err (!%p2044_p10)
}
  0x61   : > { %1799 = dma.hbm_to_vmem [thread:$0]  (!%p2645_p5), %s3506_s5, 16, %s2649_s27, [#allocation13]  }
  0x62   : > { %s3507_s7 = sld [smem:[#allocation54_spill]] }
  0x68   : > { %s2048_s14 = scalar_lea.hbm %s3507_s7, 16 }
  0x69   : > { %p2049_p11 = scmp.ne.s32.totalorder %s3507_s7, %s2048_s14  ;;  %p2055_p0 = scmp.lt.u32.totalorder %s2048_s14, %s3507_s7 }
  0x6b   : > { %p2051_p12 = pnand %p2049_p11, %p2661_p7 }
  0x6d   : > { %p2052_p13 = pneg %p2051_p12 }
  0x6f   : > { %p2057_p2 = pnand %p2055_p0, %p2052_p13 }
  0x71   : > { %2060 = shalt.err (!%p2057_p2)
}
  0x72   : > { %s2061_s23 = scalar_lea.vmem %s409_s2, 16  ;;  %s2068_s27 = scalar_lea.vmem %s409_s2, 32 }
  0x73   : > { %p2062_p4 = scmp.ne.s32.totalorder %s409_s2, %s2061_s23  ;;  %p2069_p9 = scmp.lt.s32.totalorder %s409_s2, %s409_s2 }
  0x74   : > { %p2070_p10 = scmp.lt.s32.totalorder %s2068_s27, %s2061_s23 }
  0x75   : > { %p2064_p6 = pnand %p2062_p4, %p2661_p7 }
  0x76   : > { %p2071_p1 = por %p2070_p10, %p2069_p9 }
  0x77   : > { %p2065_p8 = pneg %p2064_p6 }
  0x79   : > { %p2072_p3 = pnand %p2071_p1, %p2065_p8 }
  0x7b   : > { %2075 = shalt.err (!%p2072_p3)
}
  0x7c   : > { %1805 = dma.hbm_to_vmem [thread:$0]  (!%p2645_p5), %s3507_s7, 16, %s409_s2, [#allocation16]  }
  0x7d   : > { %s2483_s25 = smov [#allocation18]   ;;  %s3508_s9 = sld [smem:[#allocation56_spill]] }
  0x7e   : > { %s432_s13 = sshll.u32 %s2483_s25, 4  ;;  %s433_s13 = int_to_ptr.vmem [resolvable:$true] %s432_s13 }
  0x83   : > { %s2076_s26 = scalar_lea.hbm %s3508_s9, 16 }
  0x84   : > { %p2077_p11 = scmp.ne.s32.totalorder %s3508_s9, %s2076_s26  ;;  %p2083_p12 = scmp.lt.u32.totalorder %s2076_s26, %s3508_s9 }
  0x86   : > { %p2079_p1 = pnand %p2077_p11, %p2661_p7 }
  0x88   : > { %p2080_p3 = pneg %p2079_p1 }
  0x8a   : > { %p2085_p13 = pnand %p2083_p12, %p2080_p3 }
  0x8c   : > { %2088 = shalt.err (!%p2085_p13)
}
  0x8d   : > { %s2089_s2 = scalar_lea.vmem %s433_s13, 16  ;;  %s2096_s10 = scalar_lea.vmem %s433_s13, 32 }
  0x8e   : > { %p2090_p0 = scmp.ne.s32.totalorder %s433_s13, %s2089_s2  ;;  %p2097_p6 = scmp.lt.s32.totalorder %s433_s13, %s433_s13 }
  0x8f   : > { %p2098_p8 = scmp.lt.s32.totalorder %s2096_s10, %s2089_s2 }
  0x90   : > { %p2092_p2 = pnand %p2090_p0, %p2661_p7 }
  0x91   : > { %p2099_p9 = por %p2098_p8, %p2097_p6 }
  0x92   : > { %p2093_p4 = pneg %p2092_p2 }
  0x94   : > { %p2100_p10 = pnand %p2099_p9, %p2093_p4 }
  0x96   : > { %2103 = shalt.err (!%p2100_p10)
}
  0x97   : > { %1811 = dma.hbm_to_vmem [thread:$0]  (!%p2645_p5), %s3508_s9, 16, %s433_s13, [#allocation19]  }
  0x98   : > { %s1593_s14 = sadd.s32 4294967294, %s2476_s30   ;;  %s43_s11 = sadd.s32 1, %s2468_s28 }
  0x99   : > { %p44_p11 = scmp.ge.s32.totalorder %s43_s11, 4  ;;  %s46_s26 = sadd.s32 1, %s2472_s29 }
  0x9a   : > { %p3458_p1 = scmp.eq.s32.totalorder %s2476_s30, 0  ;;  %p98_p3 = scmp.ne.s32.totalorder %s2444_s22, %s2440_s21 }
  0x9b   : > { %s3599_s11 = smov (%p44_p11, %s43_s11), 0  ;;  %s3601_s26 = smov (!%p44_p11, %s46_s26), %s2472_s29 }
  0x9c   : > { %3509 = sst [smem:[#allocation42_spill]] %s3599_s11  ;;  %p104_p12 = scmp.ne.s32.totalorder %s2440_s21, %s2436_s20 }
  0x9d   : > { %p334_p13 = scmp.eq.s32.totalorder %s2630_s12, 7  ;;  %p2765_p0 = por %p98_p3, %p3458_p1 }
  0x9e   : > { %p340_p2 = scmp.eq.s32.totalorder %s1593_s14, 7  ;;  %p3511_p4 = scmp.eq.s32.totalorder %s2630_s12, 0 }
  0x9f   : > { %p2775_p8 = por %p334_p13, %p98_p3  ;;  %p3457_p10 = scmp.lt.s32.totalorder %s2476_s30, 8 }
  0xa0   : > { %p2771_p6 = por %p104_p12, %p3511_p4  ;;  %p2779_p9 = por %p340_p2, %p104_p12 }
  0xa1   : > { %s3514_s27 = scalar_select %p2775_p8, 1, 0 }
  0xa2   : > { %s3512_s23 = scalar_select %p2771_p6, 1, 0 }
  0xa3   : > { %3515 = sst [smem:[#allocation44_spill]] %s3514_s27  ;;  %s2785_s10 = sshll.u32 %s2472_s29, 5 }
  0xa4   : > { %3513 = sst [smem:[#allocation43_spill]] %s3512_s23  ;;  %s481_s24 = sand.u32 1, %s2476_s30  }
  0xa5   : > { %s3516_s2 = scalar_select %p2779_p9, 1, 0 }
  0xa6   : > { %s483_s25 = sand.u32 1, %s2444_s22   ;;  %s1670_s17 = sshll.u32 %s2468_s28, 3 }
  0xa7   : > { %3517 = sst [smem:[#allocation45_spill]] %s3516_s2  ;;  %s1616_s14 = sshll.u32 %s483_s25, 6 }
  0xa8   : > { %s492_s15 = sadd.s32 %s1670_s17, %s2785_s10  ;;  %s485_s19 = scalar_lea.vmem [#allocation6], %s1616_s14 }
  0xa9   : > { %s1620_s18 = sshll.u32 %s492_s15, 7  ;;  %s495_s3 = sshll.u32 %s485_s19, 4  ;;  %s2796_s3 = int_to_ptr.vmem [resolvable:$true] %s495_s3 }
  0xaa   : > { %s3518_s1 = sld [smem:[#allocation48_spill]]  ;;  %p2802_p11 = pnand %p3457_p10, %p2765_p0 }
  0xab   : > { %s2484_s19 = smov [#allocation11]   ;;  %s2808_s5 = scalar_lea.sflag [#allocation7], %s481_s24 }
  0xac   : > { %s373_s17 = sshll.u32 %s2484_s19, 4  ;;  %p2106_p12 = pneg %p2802_p11  ;;  %s2806_s17 = int_to_ptr.vmem [resolvable:$true] %s373_s17 }
  0xb0   : > { %s2794_s9 = scalar_lea.hbm %s3518_s1, %s1620_s18  ;;  %s2109_s13 = scalar_lea.hbm %s3518_s1, 8192 }
  0xb1   : > { %s2104_s7 = scalar_lea.hbm %s2794_s9, 1024  ;;  %p2110_p0 = scmp.lt.u32.totalorder %s2794_s9, %s3518_s1 }
  0xb2   : > { %p2105_p3 = scmp.ne.s32.totalorder %s2794_s9, %s2104_s7  ;;  %p2111_p4 = scmp.lt.u32.totalorder %s2109_s13, %s2104_s7 }
  0xb3   : > { %p2113_p1 = scmp.lt.u32.totalorder %s2104_s7, %s2794_s9 }
  0xb4   : > { %p2107_p13 = pnand %p2106_p12, %p2105_p3  ;;  %p2112_p10 = por %p2111_p4, %p2110_p0 }
  0xb6   : > { %p2108_p2 = pneg %p2107_p13  ;;  %p2114_p9 = por %p2113_p1, %p2112_p10 }
  0xb8   : > { %p2115_p8 = pnand %p2114_p9, %p2108_p2 }
  0xba   : > { %2118 = shalt.err (!%p2115_p8)
}
  0xbb   : > { %s2119_s24 = scalar_lea.vmem %s2796_s3, 1024  ;;  %s2485_s19 = smov [#allocation6]  }
  0xbc   : > { %p2120_p3 = scmp.ne.s32.totalorder %s2796_s3, %s2119_s24  ;;  %s2124_s18 = sshll.u32 %s2485_s19, 4  ;;  %s2125_s18 = int_to_ptr.vmem [resolvable:$false] %s2124_s18 }
  0xbd   : > { %s2126_s2 = scalar_lea.vmem %s2125_s18, 2048  ;;  %p2127_p5 = scmp.lt.s32.totalorder %s2796_s3, %s2125_s18 }
  0xbe   : > { %p2122_p13 = pnand %p2120_p3, %p2106_p12  ;;  %p2128_p0 = scmp.lt.s32.totalorder %s2126_s2, %s2119_s24 }
  0xc0   : > { %p2123_p6 = pneg %p2122_p13  ;;  %p2129_p4 = por %p2128_p0, %p2127_p5 }
  0xc2   : > { %p2130_p1 = pnand %p2129_p4, %p2123_p6 }
  0xc4   : > { %2133 = shalt.err (!%p2130_p1)
}
  0xc5   : > { %s3463_s7 = smov 128   ;;  %s3465_s15 = smov 8  }
  0xc6   : > { %1821 = dma.hbm_to_vmem [thread:$0]  (!%p2802_p11), %s2794_s9, 1024, %s2796_s3, %s2808_s5, %s3463_s7, %s3463_s7, %s3465_s15  }
  0xc7   : > { %s3520_s4 = sld [smem:[#allocation51_spill]] }
  0xcd   : > { %s2134_s19 = scalar_lea.hbm %s3520_s4, 16 }
  0xce   : > { %p2135_p5 = scmp.ne.s32.totalorder %s3520_s4, %s2134_s19  ;;  %p2141_p9 = scmp.lt.u32.totalorder %s2134_s19, %s3520_s4 }
  0xd0   : > { %p2137_p6 = pnand %p2135_p5, %p2661_p7 }
  0xd2   : > { %p2138_p8 = pneg %p2137_p6 }
  0xd4   : > { %p2143_p10 = pnand %p2141_p9, %p2138_p8 }
  0xd6   : > { %2146 = shalt.err (!%p2143_p10)
}
  0xd7   : > { %s2147_s3 = scalar_lea.vmem %s2806_s17, 16  ;;  %s2154_s9 = scalar_lea.vmem %s2806_s17, 32 }
  0xd8   : > { %p2148_p11 = scmp.ne.s32.totalorder %s2806_s17, %s2147_s3  ;;  %p2155_p3 = scmp.lt.s32.totalorder %s2806_s17, %s2806_s17 }
  0xd9   : > { %p2156_p13 = scmp.lt.s32.totalorder %s2154_s9, %s2147_s3 }
  0xda   : > { %p2150_p12 = pnand %p2148_p11, %p2661_p7 }
  0xdb   : > { %p2157_p0 = por %p2156_p13, %p2155_p3 }
  0xdc   : > { %p2151_p2 = pneg %p2150_p12 }
  0xde   : > { %p2158_p4 = pnand %p2157_p0, %p2151_p2 }
  0xe0   : > { %2161 = shalt.err (!%p2158_p4)
}
  0xe1   : > { %p3521_p1 = scmp.ne.s32.totalorder %s3503_s16, 0  ;;  %s2488_s13 = smov [#allocation14]  }
  0xe2   : > { %s394_s14 = sshll.u32 %s2488_s13, 4  ;;  %s2489_s19 = smov [#allocation17]   ;;  %s395_s14 = int_to_ptr.vmem [resolvable:$true] %s394_s14 }
  0xe3   : > { %1796 = dma.hbm_to_vmem [thread:$0]  (!%p3521_p1), %s3520_s4, 16, %s2806_s17, [#allocation10]  }
  0xe4   : > { %s418_s24 = sshll.u32 %s2489_s19, 4  ;;  %s3522_s6 = sld [smem:[#allocation53_spill]]  ;;  %s419_s24 = int_to_ptr.vmem [resolvable:$true] %s418_s24 }
  0xea   : > { %s2162_s3 = scalar_lea.hbm %s3522_s6, 256 }
  0xeb   : > { %p2163_p5 = scmp.ne.s32.totalorder %s3522_s6, %s2162_s3  ;;  %p2169_p9 = scmp.lt.u32.totalorder %s2162_s3, %s3522_s6 }
  0xed   : > { %p2165_p6 = pnand %p2163_p5, %p2661_p7 }
  0xef   : > { %p2166_p8 = pneg %p2165_p6 }
  0xf1   : > { %p2171_p10 = pnand %p2169_p9, %p2166_p8 }
  0xf3   : > { %2174 = shalt.err (!%p2171_p10)
}
  0xf4   : > { %s2175_s17 = scalar_lea.vmem %s395_s14, 256  ;;  %p2183_p3 = scmp.lt.s32.totalorder %s395_s14, %s395_s14 }
  0xf5   : > { %p2176_p11 = scmp.ne.s32.totalorder %s395_s14, %s2175_s17  ;;  %p2184_p13 = scmp.lt.s32.totalorder %s2175_s17, %s2175_s17 }
  0xf7   : > { %p2178_p12 = pnand %p2176_p11, %p2661_p7  ;;  %p2185_p0 = por %p2184_p13, %p2183_p3 }
  0xf9   : > { %p2179_p2 = pneg %p2178_p12 }
  0xfb   : > { %p2186_p4 = pnand %p2185_p0, %p2179_p2 }
  0xfd   : > { %2189 = shalt.err (!%p2186_p4)
}
  0xfe   : > { %s3523_s7 = smov 8   ;;  %s3524_s25 = smov 128  }
  0xff   : > { %1802 = dma.hbm_to_vmem [thread:$0]  (!%p3521_p1), %s3522_s6, 256, %s395_s14, [#allocation13], %s3524_s25, %s3524_s25, %s3523_s7  }
 0x100   : > { %s3525_s8 = sld [smem:[#allocation55_spill]] }
 0x106   : > { %s2190_s2 = scalar_lea.hbm %s3525_s8, 1024 }
 0x107   : > { %p2191_p5 = scmp.ne.s32.totalorder %s3525_s8, %s2190_s2  ;;  %p2197_p9 = scmp.lt.u32.totalorder %s2190_s2, %s3525_s8 }
 0x109   : > { %p2193_p6 = pnand %p2191_p5, %p2661_p7 }
 0x10b   : > { %p2194_p8 = pneg %p2193_p6 }
 0x10d   : > { %p2199_p10 = pnand %p2197_p9, %p2194_p8 }
 0x10f   : > { %2202 = shalt.err (!%p2199_p10)
}
 0x110   : > { %s2203_s15 = scalar_lea.vmem %s419_s24, 1024  ;;  %p2211_p3 = scmp.lt.s32.totalorder %s419_s24, %s419_s24 }
 0x111   : > { %p2204_p11 = scmp.ne.s32.totalorder %s419_s24, %s2203_s15  ;;  %p2212_p13 = scmp.lt.s32.totalorder %s2203_s15, %s2203_s15 }
 0x113   : > { %p2206_p12 = pnand %p2204_p11, %p2661_p7  ;;  %p2213_p0 = por %p2212_p13, %p2211_p3 }
 0x115   : > { %p2207_p2 = pneg %p2206_p12 }
 0x117   : > { %p2214_p4 = pnand %p2213_p0, %p2207_p2 }
 0x119   : > { %2217 = shalt.err (!%p2214_p4)
}
 0x11a   : > { %s3526_s14 = smov 4   ;;  %s3527_s13 = smov 64  }
 0x11b   : > { %1808 = dma.hbm_to_vmem [thread:$0]  (!%p3521_p1), %s3525_s8, 1024, %s419_s24, [#allocation16], %s3527_s13, %s3527_s13, %s3526_s14  }
 0x11c   : > { %s2490_s2 = smov [#allocation20]   ;;  %s3528_s17 = sld [smem:[#allocation57_spill]] }
 0x11d   : > { %s443_s3 = sshll.u32 %s2490_s2, 4  ;;  %s444_s3 = int_to_ptr.vmem [resolvable:$true] %s443_s3 }
 0x122   : > { %s3529_s4 = smov %s3528_s17  ;;  %s2218_s15 = scalar_lea.hbm %s3528_s17, 16 }
 0x123   : > { %p2219_p5 = scmp.ne.s32.totalorder %s3529_s4, %s2218_s15  ;;  %p2225_p9 = scmp.lt.u32.totalorder %s2218_s15, %s3529_s4 }
 0x125   : > { %p2221_p6 = pnand %p2219_p5, %p2661_p7 }
 0x127   : > { %p2222_p8 = pneg %p2221_p6 }
 0x129   : > { %p2227_p10 = pnand %p2225_p9, %p2222_p8 }
 0x12b   : > { %2230 = shalt.err (!%p2227_p10)
}
 0x12c   : > { %s2231_s24 = scalar_lea.vmem %s444_s3, 16  ;;  %s2238_s14 = scalar_lea.vmem %s444_s3, 32 }
 0x12d   : > { %p2232_p11 = scmp.ne.s32.totalorder %s444_s3, %s2231_s24  ;;  %p2239_p3 = scmp.lt.s32.totalorder %s444_s3, %s444_s3 }
 0x12e   : > { %p2240_p13 = scmp.lt.s32.totalorder %s2238_s14, %s2231_s24 }
 0x12f   : > { %p2234_p12 = pnand %p2232_p11, %p2661_p7 }
 0x130   : > { %p2241_p0 = por %p2240_p13, %p2239_p3 }
 0x131   : > { %p2235_p2 = pneg %p2234_p12 }
 0x133   : > { %p2242_p4 = pnand %p2241_p0, %p2235_p2 }
 0x135   : > { %2245 = shalt.err (!%p2242_p4)
}
 0x136   : > { %s3530_s23 = sld [smem:[#allocation36_spill]]  ;;  %s3531_s0 = sld [smem:[#allocation35_spill]] }
 0x137   : > { %s3532_s27 = sld [smem:[#allocation34_spill]]  ;;  %p48_p7 = scmp.ge.s32.totalorder %s3601_s26, 2 }
 0x138   : > { %1814 = dma.hbm_to_vmem [thread:$0]  (!%p3521_p1), %s3529_s4, 16, %s444_s3, [#allocation19]  }
 0x139   : > { %s1594_s13 = sshll.u32 %s2468_s28, 2  ;;  %s1596_s16 = sshll.u32 %s3599_s11, 2 }
 0x13a   : > { %s1595_s19 = sadd.s32 4294967295, %s1594_s13  ;;  %s3603_s26 = smov (%p48_p7, %s3601_s26), 0 }
 0x13b   : > { %3533 = sst [smem:[#allocation46_spill]] %s3603_s26  ;;  %p52_p5 = scmp.gt.s32.totalorder %s1595_s19, 0 }
 0x13c   : > { %s1597_s18 = sadd.s32 4294967295, %s1596_s16  ;;  %s2931_s2 = ssub.s32 %s2472_s29, %s3603_s26 }
 0x13d   : > { %p56_p6 = scmp.gt.s32.totalorder %s1597_s18, 0  ;;  %s3605_s19 = smov (!%p52_p5, %s1595_s19), 0 }
 0x13e   : > { %s63_s3 = sadd.s32 1, %s3530_s23  ;;  %p70_p1 = scmp.ne.s32.totalorder %s3530_s23, %s3531_s0 }
 0x13f   : > { %s3607_s18 = smov (!%p56_p6, %s1597_s18), 0  ;;  %p76_p8 = scmp.ne.s32.totalorder %s3531_s0, %s3532_s27 }
 0x140   : > { %s59_s9 = ssub.s32 %s3605_s19, %s3607_s18  ;;  %p3534_p9 = scmp.eq.s32.totalorder %s2476_s30, 0 }
 0x141   : > { %s60_s1 = sor.u32 %s59_s9, %s2931_s2  ;;  %p3536_p12 = scmp.eq.s32.totalorder %s2630_s12, 0 }
 0x142   : > { %p2941_p10 = por %p3534_p9, %p70_p1  ;;  %p61_p11 = scmp.eq.s32.totalorder %s60_s1, 0 }
 0x143   : > { %p2947_p2 = por %p3536_p12, %p76_p8  ;;  %s3538_s24 = ssub.s32 %s2468_s28, %s3599_s11 }
 0x144   : > { %s88_s14 = sor.u32 %s3538_s24, %s2931_s2  ;;  %s2955_s6 = sadd.s32 4, %s1594_s13 }
 0x145   : > { %s2958_s20 = scalar_select %p61_p11, %s3530_s23, %s63_s3  }
 0x146   : > { %p89_p3 = scmp.eq.s32.totalorder %s88_s14, 0  ;;  %s2961_s0 = sadd.s32 4, %s1596_s16 }
 0x147   : > { %s454_s27 = sand.u32 1, %s3530_s23   ;;  %s3539_s18 = sadd.s32 1, %s2444_s22 }
 0x148   : > { %s2967_s9 = scalar_select %p89_p3, %s2444_s22, %s3539_s18  }
 0x149   : > { %s1610_s1 = sshll.u32 %s454_s27, 4  ;;  %s1613_s4 = sshll.u32 %s3605_s19, 1 }
 0x14a   : > { %s468_s24 = sadd.s32 %s2785_s10, %s1613_s4  ;;  %s458_s8 = scalar_lea.vmem [#allocation3], %s1610_s1 }
 0x14b   : > { %s1615_s13 = sshll.u32 %s468_s24, 7  ;;  %s471_s26 = sshll.u32 %s458_s8, 4  ;;  %s2976_s26 = int_to_ptr.vmem [resolvable:$true] %s471_s26 }
 0x14c   : > { %s3540_s3 = sld [smem:[#allocation47_spill]]  ;;  %p3541_p4 = scmp.lt.s32.totalorder %s2476_s30, 8 }
 0x14d   : > { %s2986_s4 = scalar_lea.sflag [#allocation4], %s454_s27 }
 0x14e   : > { %p2982_p7 = pnand %p3541_p4, %p2941_p10 }
 0x150   : > { %p2248_p6 = pneg %p2982_p7 }
 0x152   : > { %s2974_s28 = scalar_lea.hbm %s3540_s3, %s1615_s13  ;;  %s2251_s19 = scalar_lea.hbm %s3540_s3, 8192 }
 0x153   : > { %s2246_s8 = scalar_lea.hbm %s2974_s28, 256  ;;  %p2252_p9 = scmp.lt.u32.totalorder %s2974_s28, %s3540_s3 }
 0x154   : > { %p2247_p5 = scmp.ne.s32.totalorder %s2974_s28, %s2246_s8  ;;  %p2253_p10 = scmp.lt.u32.totalorder %s2251_s19, %s2246_s8 }
 0x155   : > { %p2255_p12 = scmp.lt.u32.totalorder %s2246_s8, %s2974_s28 }
 0x156   : > { %p2249_p1 = pnand %p2248_p6, %p2247_p5  ;;  %p2254_p11 = por %p2253_p10, %p2252_p9 }
 0x158   : > { %p2250_p8 = pneg %p2249_p1  ;;  %p2256_p3 = por %p2255_p12, %p2254_p11 }
 0x15a   : > { %p2257_p4 = pnand %p2256_p3, %p2250_p8 }
 0x15c   : > { %2260 = shalt.err (!%p2257_p4)
}
 0x15d   : > { %s2261_s14 = scalar_lea.vmem %s2976_s26, 256  ;;  %s2491_s27 = smov [#allocation3]  }
 0x15e   : > { %p2262_p5 = scmp.ne.s32.totalorder %s2976_s26, %s2261_s14  ;;  %s2266_s18 = sshll.u32 %s2491_s27, 4  ;;  %s2267_s18 = int_to_ptr.vmem [resolvable:$false] %s2266_s18 }
 0x15f   : > { %s2268_s1 = scalar_lea.vmem %s2267_s18, 512  ;;  %p2269_p13 = scmp.lt.s32.totalorder %s2976_s26, %s2267_s18 }
 0x160   : > { %p2264_p1 = pnand %p2262_p5, %p2248_p6  ;;  %p2270_p9 = scmp.lt.s32.totalorder %s2268_s1, %s2261_s14 }
 0x162   : > { %p2265_p0 = pneg %p2264_p1  ;;  %p2271_p10 = por %p2270_p9, %p2269_p13 }
 0x164   : > { %p2272_p11 = pnand %p2271_p10, %p2265_p0 }
 0x166   : > { %2275 = shalt.err (!%p2272_p11)
}
 0x167   : > { %s3543_s24 = sld [smem:[#allocation32_spill]]  ;;  %s3544_s13 = sld [smem:[#allocation31_spill]] }
 0x168   : > { %s3545_s8 = sld [smem:[#allocation30_spill]]  ;;  %p3546_p13 = scmp.lt.s32.totalorder %s2955_s6, 15 }
 0x169   : > { %1818 = dma.hbm_to_vmem [thread:$0]  (!%p2982_p7), %s2974_s28, 256, %s2976_s26, %s2986_s4, %s3524_s25, %s3524_s25, %s3523_s7  }
 0x16a   : > { %s3609_s6 = smov (!%p3546_p13, %s2955_s6), 15  ;;  %p3547_p0 = scmp.lt.s32.totalorder %s2961_s0, 15 }
 0x16b   : > { %p3548_p12 = scmp.eq.s32.totalorder %s2476_s30, 0  ;;  %p3550_p5 = scmp.eq.s32.totalorder %s2630_s12, 0 }
 0x16c   : > { %s3611_s0 = smov (!%p3547_p0, %s2961_s0), 15  ;;  %s1623_s4 = sshll.u32 %s3609_s6, 1 }
 0x16d   : > { %s127_s23 = sadd.s32 1, %s3543_s24  ;;  %p134_p6 = scmp.ne.s32.totalorder %s3543_s24, %s3544_s13 }
 0x16e   : > { %s123_s29 = ssub.s32 %s3609_s6, %s3611_s0  ;;  %p140_p8 = scmp.ne.s32.totalorder %s3544_s13, %s3545_s8 }
 0x16f   : > { %s124_s11 = sor.u32 %s123_s29, %s2931_s2  ;;  %p3031_p3 = por %p134_p6, %p3548_p12 }
 0x170   : > { %p125_p4 = scmp.eq.s32.totalorder %s124_s11, 0  ;;  %p3037_p1 = por %p140_p8, %p3550_p5 }
 0x171   : > { %s507_s26 = sand.u32 1, %s3543_s24   ;;  %s519_s16 = sadd.s32 %s1623_s4, %s2785_s10 }
 0x172   : > { %s3551_s28 = scalar_select %p3037_p1, 1, 0 }
 0x173   : > { %s3613_s24 = smov (!%p125_p4, %s3543_s24), %s127_s23  ;;  %s1621_s0 = sshll.u32 %s507_s26, 4 }
 0x174   : > { %s1625_s17 = sshll.u32 %s519_s16, 7  ;;  %s3552_s27 = sld [smem:[#allocation49_spill]] }
 0x175   : > { %s509_s13 = scalar_lea.vmem [#allocation8], %s1621_s0  ;;  %p3554_p7 = scmp.lt.s32.totalorder %s2476_s30, 8 }
 0x176   : > { %s522_s8 = sshll.u32 %s509_s13, 4  ;;  %s3051_s8 = int_to_ptr.vmem [resolvable:$true] %s522_s8 }
 0x177   : > { %p3057_p9 = pnand %p3554_p7, %p3031_p3 }
 0x179   : > { %p2278_p11 = pneg %p3057_p9 }
 0x17a   : > { %s3553_s1 = smov %s3552_s27  ;;  %s3049_s18 = scalar_lea.hbm %s3552_s27, %s1625_s17 }
 0x17b   : > { %s2276_s10 = scalar_lea.hbm %s3049_s18, 256  ;;  %s2281_s11 = scalar_lea.hbm %s3553_s1, 8192 }
 0x17c   : > { %p2277_p10 = scmp.ne.s32.totalorder %s3049_s18, %s2276_s10  ;;  %p2282_p6 = scmp.lt.u32.totalorder %s3049_s18, %s3553_s1 }
 0x17d   : > { %p2283_p8 = scmp.lt.u32.totalorder %s2281_s11, %s2276_s10  ;;  %p2285_p3 = scmp.lt.u32.totalorder %s2276_s10, %s3049_s18 }
 0x17e   : > { %p2279_p13 = pnand %p2278_p11, %p2277_p10 }
 0x17f   : > { %p2284_p12 = por %p2283_p8, %p2282_p6 }
 0x180   : > { %p2280_p0 = pneg %p2279_p13 }
 0x181   : > { %p2286_p4 = por %p2285_p3, %p2284_p12 }
 0x183   : > { %p2287_p5 = pnand %p2286_p4, %p2280_p0 }
 0x185   : > { %2290 = shalt.err (!%p2287_p5)
}
 0x186   : > { %s2291_s4 = scalar_lea.vmem %s3051_s8, 256  ;;  %s2492_s0 = smov [#allocation8]  }
 0x187   : > { %p2292_p7 = scmp.ne.s32.totalorder %s3051_s8, %s2291_s4  ;;  %s2296_s16 = sshll.u32 %s2492_s0, 4  ;;  %s2297_s16 = int_to_ptr.vmem [resolvable:$false] %s2296_s16 }
 0x188   : > { %s2298_s17 = scalar_lea.vmem %s2297_s16, 512  ;;  %p2299_p1 = scmp.lt.s32.totalorder %s3051_s8, %s2297_s16 }
 0x189   : > { %p2294_p10 = pnand %p2292_p7, %p2278_p11  ;;  %p2300_p6 = scmp.lt.s32.totalorder %s2298_s17, %s2291_s4 }
 0x18b   : > { %p2295_p13 = pneg %p2294_p10  ;;  %p2301_p8 = por %p2300_p6, %p2299_p1 }
 0x18d   : > { %p2302_p12 = pnand %p2301_p8, %p2295_p13 }
 0x18f   : > { %2305 = shalt.err (!%p2302_p12)
}
 0x190   : > { %1824 = dma.hbm_to_vmem [thread:$0]  (!%p3057_p9), %s3049_s18, 256, %s3051_s8, %s2808_s5, %s3524_s25, %s3524_s25, %s3523_s7  }
 0x191   : > { %s3556_s2 = sld [smem:[#allocation41_spill]] }
 0x197   : > { %p3557_p11 = scmp.ne.s32.totalorder %s3556_s2, 0 }
 0x198   : > { %s3558_s14 = sld [smem:[#allocation35_spill]] (!%p3557_p11) }
 0x199   : > { %534 = sbr.rel (%p3557_p11) target bundleno = 1033 (0x409), region = 64 }
 0x19e   : > { %s536_s27 = sand.u32 (!%p3557_p11), 1, %s3558_s14  }
 0x19f   : > { %s3093_s13 = sshll.u32 (!%p3557_p11), %s536_s27, 4  ;;  %s537_s10 = scalar_lea.sflag (!%p3557_p11), [#allocation4], %s536_s27 }
 0x1a0   : > { %s540_s23 = scalar_lea.vmem [#allocation3], %s3093_s13 }
 0x1a1   : > { %2391 = dma.done.wait (%p2947_p2), %s537_s10, 256  }
 0x1a2   : > { %2393 = vsyncadd (%p2947_p2), %s537_s10, 4294967040  ;;  %s3559_s5 = sld [smem:[#allocation43_spill]]  ;;  %s545_s7 = sand.u32 1, %s2630_s12  }
 0x1a3   : > { %s547_s25 = sand.u32 1, %s2440_s21   ;;  %s546_s8 = scalar_lea.sflag [#allocation7], %s545_s7 }
 0x1a4   : > { %s3104_s18 = sshll.u32 %s547_s25, 6 }
 0x1a5   : > { %s3107_s6 = scalar_lea.vmem [#allocation6], %s3104_s18 }
 0x1a8   : > { %p3560_p1 = scmp.ne.s32.totalorder %s3559_s5, 0 }
 0x1aa   : > { %2395 = dma.done.wait (%p3560_p1), %s546_s8, 1024  }
 0x1ab   : > { %2397 = vsyncadd (%p3560_p1), %s546_s8, 4294966272  ;;  %s3561_s15 = sld [smem:[#allocation31_spill]]  ;;  %p3562_p2 = scmp.ne.s32.totalorder %s3551_s28, 0 }
 0x1b1   : > { %s556_s29 = sand.u32 1, %s3561_s15  }
 0x1b2   : > { %s3114_s11 = sshll.u32 %s556_s29, 4 }
 0x1b3   : > { %s558_s19 = scalar_lea.vmem [#allocation8], %s3114_s11 }
 0x1b4   : > { %2399 = dma.done.wait (%p3562_p2), %s546_s8, 256  }
 0x1b5   : > { %2401 = vsyncadd (%p3562_p2), %s546_s8, 4294967040  ;;  %p3563_p9 = scmp.eq.s32.totalorder %s2630_s12, 0 }
 0x1b7   : > { %2403 = dma.done.wait (%p3563_p9), [#allocation10], 1040   ;;  %p3564_p0 = pmov %p3563_p9 }
 0x1b9   : > { %2405 = vsyncadd (%p3564_p0), [#allocation10], 4294966256  ;;  %p3565_p3 = pmov %p3564_p0 }
 0x1ba   : > { %p3566_p4 = pmov %p3564_p0 }
 0x1bb   : > { %2407 = dma.done.wait (%p3565_p3), [#allocation13], 272  }
 0x1bc   : > { %2409 = vsyncadd (%p3566_p4), [#allocation13], 4294967024  ;;  %p3567_p5 = pmov %p3564_p0 }
 0x1bd   : > { %p3568_p7 = pmov %p3564_p0 }
 0x1be   : > { %2411 = dma.done.wait (%p3567_p5), [#allocation16], 1040  }
 0x1bf   : > { %2413 = vsyncadd (%p3568_p7), [#allocation16], 4294966256  ;;  %p3569_p10 = pmov %p3564_p0 }
 0x1c0   : > { %p3570_p13 = pmov %p3564_p0 }
 0x1c1   : > { %2415 = dma.done.wait (%p3569_p10), [#allocation19], 32  }
 0x1c2   : > { %2417 = vsyncadd (%p3570_p13), [#allocation19], 4294967264  ;;  %v2493_v0 = vmov 0.0   ;;  %v1976_v1 = vld [vmem:[#allocation9] sm:$0xff]   ;;  %v1977_v2 = vld [vmem:[#allocation9 + $0x8] sm:$0xff]   ;;  %s3178_s12 = scalar_lea.vmem [#allocation21], %s3104_s18 }
 0x1c3   : > { %863 = vst [vmem:[#allocation2] sm:$0x1] %v2493_v0  ;;  %864 = vst [vmem:[#allocation2 + $0x18] sm:$0x1] %v2493_v0  ;;  %1698 = vmatprep.subr.bf16.mxu0 %v1976_v1  ;;  %v1978_v3 = vld [vmem:[#allocation9 + $0x10] sm:$0xff]   ;;  %v1979_v4 = vld [vmem:[#allocation9 + $0x18] sm:$0xff]  }
 0x1c4   : > { %865 = vst [vmem:[#allocation2 + $0x30] sm:$0x1] %v2493_v0  ;;  %866 = vst [vmem:[#allocation2 + $0x48] sm:$0x1] %v2493_v0  ;;  %1699 = vmatpush3.bf16.msra.mxu0 %v1976_v1  ;;  %v658_v5 = vld [vmem:[%s540_s23] sm:$0xff]  ;;  %v659_v6 = vld [vmem:[%s540_s23 + $0x8] sm:$0xff] }
 0x1c5   : > { %867 = vst [vmem:[#allocation2 + $0x60] sm:$0x1] %v2493_v0  ;;  %868 = vst [vmem:[#allocation2 + $0x78] sm:$0x1] %v2493_v0  ;;  %1700 = vmatprep.subr.bf16.mxu0 %v1977_v2  ;;  %v662_v7 = vpack.c.bf16 %v659_v6, %v658_v5  ;;  %v1980_v8 = vld [vmem:[#allocation9 + $0x20] sm:$0xff]   ;;  %v1981_v9 = vld [vmem:[#allocation9 + $0x28] sm:$0xff]  }
 0x1c6   : > { %869 = vst [vmem:[#allocation2 + $0x11] sm:$0x1] %v2493_v0  ;;  %870 = vst [vmem:[#allocation2 + $0x29] sm:$0x1] %v2493_v0  ;;  %v1982_v10 = vld [vmem:[#allocation9 + $0x30] sm:$0xff]   ;;  %v1983_v11 = vld [vmem:[#allocation9 + $0x38] sm:$0xff]  }
 0x1c7   : > { %871 = vst [vmem:[#allocation2 + $0x41] sm:$0x1] %v2493_v0  ;;  %872 = vst [vmem:[#allocation2 + $0x59] sm:$0x1] %v2493_v0  ;;  %1714 = vmatprep.mubr.bf16.mxu0 %v662_v7  ;;  %v3142_v12 = vld [vmem:[%s3107_s6] sm:$0xff]  ;;  %v3145_v13 = vld [vmem:[%s3107_s6 + $0x8] sm:$0xff] }
 0x1c8   : > { %873 = vst [vmem:[#allocation2 + $0x71] sm:$0x1] %v2493_v0  ;;  %874 = vst [vmem:[#allocation2 + $0x89] sm:$0x1] %v2493_v0  ;;  %1701 = vmatpush3.bf16.msra.mxu0 %v1977_v2  ;;  %v3148_v14 = vld [vmem:[%s3107_s6 + $0x10] sm:$0xff]  ;;  %v3151_v15 = vld [vmem:[%s3107_s6 + $0x18] sm:$0xff]  ;;  %v663_v16 = vpack.c.bf16 %v3145_v13, %v3142_v12 }
 0x1c9   : > { %1702 = vmatprep.subr.bf16.mxu0 %v1978_v3  ;;  %v664_v17 = vpack.c.bf16 %v3151_v15, %v3148_v14  ;;  %v3158_v18 = vld [vmem:[%s3107_s6 + $0x20] sm:$0xff]  ;;  %v3161_v19 = vld [vmem:[%s3107_s6 + $0x28] sm:$0xff]  ;;  %v3164_v20 = vld [vmem:[%s3107_s6 + $0x30] sm:$0xff]  ;;  %s3571_s28 = sld [smem:[#allocation37_spill]] }
 0x1ca   : > { %v3167_v21 = vld [vmem:[%s3107_s6 + $0x38] sm:$0xff]  ;;  %v665_v22 = vpack.c.bf16 %v3161_v19, %v3158_v18  ;;  %v660_v24 = vld [vmem:[%s558_s19] sm:$0xff] }
 0x1cb   : > { %v666_v23 = vpack.c.bf16 %v3167_v21, %v3164_v20  ;;  %v661_v25 = vld [vmem:[%s558_s19 + $0x8] sm:$0xff]  ;;  %v1647_v27 = vld [vmem:[#allocation11] ss:$0 sm:$0xff]  ;;  %v1648_v29 = vld [vmem:[#allocation12] ss:$0 sm:$0xff] }
 0x1cc   : > { %1703 = vmatpush3.bf16.msra.mxu0 %v1978_v3  ;;  %v667_v26 = vpack.c.bf16 %v661_v25, %v660_v24 }
 0x1cd   : > { %1704 = vmatprep.subr.bf16.mxu0 %v1979_v4 }
 0x1cf   : > { %p1649_p6 = scmp.ne.s32.totalorder %s3571_s28, 0 }
 0x1d0   : > { %1705 = vmatpush3.bf16.msra.mxu0 %v1979_v4 }
 0x1d1   : > { %1706 = vmatprep.subr.bf16.mxu0 %v1980_v8 }
 0x1d4   : > { %1707 = vmatpush3.bf16.msra.mxu0 %v1980_v8 }
 0x1d5   : > { %1708 = vmatprep.subr.bf16.mxu0 %v1981_v9 }
 0x1d8   : > { %1709 = vmatpush3.bf16.msra.mxu0 %v1981_v9 }
 0x1d9   : > { %1710 = vmatprep.subr.bf16.mxu0 %v1982_v10 }
 0x1dc   : > { %1711 = vmatpush3.bf16.msra.mxu0 %v1982_v10 }
 0x1dd   : > { %1712 = vmatprep.subr.bf16.mxu0 %v1983_v11 }
 0x1e0   : > { %1713 = vmatpush3.bf16.msra.mxu0 %v1983_v11 }
 0x1e3   : > { %1715 = vmatmul.mubr.bf16.vlgmr.msra.gmra.mrb[0].mxu0 %v663_v16 }
 0x1e4   : > { %1718 = vmatprep.mubr.bf16.mxu0 %v664_v17  ;;  %v2494_v17 = vmov (!%p1649_p6), 0.0  }
 0x1eb   : > { %1719 = vmatmul.mubr.bf16.gmra.mrb[4].mxu0 %v665_v22 }
 0x1ec   : > { %1722 = vmatprep.mubr.bf16.mxu0 %v666_v23 }
 0x1f3   : > { %1723 = vmatmul.mubr.bf16.gmra.mrb[8].mxu0 %v667_v26 }
 0x2b6   : > { %v1716_v28 = vpop.f32.mrb[0].mxu0 }
 0x2b7   : > { %v822_v30 = vmul.f32 %v1716_v28, %v1647_v27  ;;  %v766_v31 = vpop.f32.mrb[1].mxu0 }
 0x2b8   : > { %v820_v32 = vmul.f32 %v1647_v27, %v766_v31  ;;  %v1717_v33 = vpop.f32.mrb[2].mxu0 }
 0x2b9   : > { %v841_v34 = vadd.f32 %v1648_v29, %v822_v30  ;;  %v823_v35 = vmul.f32 %v1717_v33, %v1647_v27  ;;  %v769_v36 = vpop.f32.mrb[3].mxu0 }
 0x2ba   : > { %v839_v37 = vadd.f32 %v1648_v29, %v820_v32  ;;  %v821_v38 = vmul.f32 %v1647_v27, %v769_v36 }
 0x2bb   : > { %v853_v39 = vmax.f32 %v841_v34, 0.0  ;;  %v842_v40 = vadd.f32 %v1648_v29, %v823_v35 }
 0x2bc   : > { %v851_v41 = vmax.f32 %v839_v37, 0.0  ;;  %v840_v42 = vadd.f32 %v1648_v29, %v821_v38 }
 0x2bd   : > { %877 = vst [vmem:[#allocation2 + $0x19] sm:$0xff] %v853_v39  ;;  %v854_v43 = vmax.f32 %v842_v40, 0.0 }
 0x2be   : > { %875 = vst [vmem:[#allocation2 + $0x1] sm:$0xff] %v851_v41  ;;  %v852_v44 = vmax.f32 %v840_v42, 0.0  ;;  %v1720_v45 = vpop.f32.mrb[4].mxu0 }
 0x2bf   : > { %878 = vst [vmem:[#allocation2 + $0x21] sm:$0xff] %v854_v43  ;;  %v826_v46 = vmul.f32 %v1720_v45, %v1647_v27  ;;  %v782_v47 = vpop.f32.mrb[5].mxu0  ;;  %891 = vst [vmem:[#allocation2] sm:$0xff] (!%p1649_p6), %v2494_v17 }
 0x2c0   : > { %876 = vst [vmem:[#allocation2 + $0x9] sm:$0xff] %v852_v44  ;;  %v824_v48 = vmul.f32 %v1647_v27, %v782_v47  ;;  %v1721_v49 = vpop.f32.mrb[6].mxu0 }
 0x2c1   : > { %v845_v50 = vadd.f32 %v1648_v29, %v826_v46  ;;  %v827_v51 = vmul.f32 %v1721_v49, %v1647_v27  ;;  %v785_v52 = vpop.f32.mrb[7].mxu0  ;;  %892 = vst [vmem:[#allocation2 + $0x8] sm:$0xff] (!%p1649_p6), %v2494_v17  ;;  %893 = vst [vmem:[#allocation2 + $0x10] sm:$0x3] (!%p1649_p6), %v2494_v17 }
 0x2c2   : > { %v843_v53 = vadd.f32 %v1648_v29, %v824_v48  ;;  %v825_v54 = vmul.f32 %v1647_v27, %v785_v52 }
 0x2c3   : > { %v857_v55 = vmax.f32 %v845_v50, 0.0  ;;  %v846_v56 = vadd.f32 %v1648_v29, %v827_v51 }
 0x2c4   : > { %v855_v57 = vmax.f32 %v843_v53, 0.0  ;;  %v844_v58 = vadd.f32 %v1648_v29, %v825_v54 }
 0x2c5   : > { %881 = vst [vmem:[#allocation2 + $0x49] sm:$0xff] %v857_v55  ;;  %v858_v59 = vmax.f32 %v846_v56, 0.0 }
 0x2c6   : > { %879 = vst [vmem:[#allocation2 + $0x31] sm:$0xff] %v855_v57  ;;  %v856_v60 = vmax.f32 %v844_v58, 0.0  ;;  %v1724_v61 = vpop.f32.mrb[8].mxu0 }
 0x2c7   : > { %882 = vst [vmem:[#allocation2 + $0x51] sm:$0xff] %v858_v59  ;;  %v830_v62 = vmul.f32 %v1724_v61, %v1647_v27  ;;  %v798_v63 = vpop.f32.mrb[9].mxu0 }
 0x2c8   : > { %880 = vst [vmem:[#allocation2 + $0x39] sm:$0xff] %v856_v60  ;;  %v828_v0 = vmul.f32 %v1647_v27, %v798_v63  ;;  %v1725_v1 = vpop.f32.mrb[10].mxu0 }
 0x2c9   : > { %v849_v2 = vadd.f32 %v1648_v29, %v830_v62  ;;  %v831_v3 = vmul.f32 %v1725_v1, %v1647_v27  ;;  %v801_v4 = vpop.f32.mrb[11].mxu0 }
 0x2ca   : > { %v847_v5 = vadd.f32 %v1648_v29, %v828_v0  ;;  %v829_v6 = vmul.f32 %v1647_v27, %v801_v4  ;;  %890 = sbr.rel (%p1649_p6) target bundleno = 721 (0x2d1), region = 112 }
 0x2cb   : > { %v861_v7 = vmax.f32 %v849_v2, 0.0  ;;  %v850_v8 = vadd.f32 %v1648_v29, %v831_v3 }
 0x2cc   : > { %v859_v9 = vmax.f32 %v847_v5, 0.0  ;;  %v848_v10 = vadd.f32 %v1648_v29, %v829_v6 }
 0x2cd   : > { %885 = vst [vmem:[#allocation2 + $0x79] sm:$0xff] %v861_v7  ;;  %v862_v11 = vmax.f32 %v850_v8, 0.0 }
 0x2ce   : > { %883 = vst [vmem:[#allocation2 + $0x61] sm:$0xff] %v859_v9  ;;  %v860_v16 = vmax.f32 %v848_v10, 0.0 }
 0x2cf   : > { %886 = vst [vmem:[#allocation2 + $0x81] sm:$0xff] %v862_v11 }
 0x2d0   : > { %884 = vst [vmem:[#allocation2 + $0x69] sm:$0xff] %v860_v16 }
 0x2d1 PF: > { %s3572_s26 = sld [smem:[#allocation37_spill]] }
 0x2d7   : > { %p1650_p8 = scmp.ne.s32.totalorder %s3572_s26, 3 }
 0x2d8   : > { %v2495_v22 = vmov (!%p1650_p8), 0.0  }
 0x2d9   : > { %897 = sbr.rel (%p1650_p8) target bundleno = 736 (0x2e0), region = 116  ;;  %899 = vst [vmem:[#allocation2 + $0x78] sm:$0xff] (!%p1650_p8), %v2495_v22  ;;  %900 = vst [vmem:[#allocation2 + $0x80] sm:$0xff] (!%p1650_p8), %v2495_v22 }
 0x2da   : > { %901 = vst [vmem:[#allocation2 + $0x88] sm:$0x3] (!%p1650_p8), %v2495_v22 }
 0x2e0 PF: > { %v1984_v23 = vld [vmem:[#allocation17] sm:$0xff]   ;;  %v912_v24 = vlaneseq  ;;  %v1985_v25 = vld [vmem:[#allocation17 + $0x8] sm:$0xff]   ;;  %v1986_v27 = vld [vmem:[#allocation17 + $0x10] sm:$0xff]   ;;  %s3573_s4 = sld [smem:[#allocation37_spill]]  ;;  %s3574_s0 = sld [smem:[#allocation38_spill]] }
 0x2e1   : > { %1726 = vmatprep.subr.bf16.mxu1 %v1984_v23  ;;  %v1987_v32 = vld [vmem:[#allocation17 + $0x18] sm:$0xff]   ;;  %v902_v33 = vld [vmem:[#allocation14] sm:$0xff]  ;;  %v905_v37 = vld [vmem:[#allocation2 + $0x8] sm:$0xff]  ;;  %s1377_s27 = sshll.u32 %s3178_s12, 4  ;;  %s3575_s13 = sld [smem:[#allocation44_spill]]  ;;  %s3348_s27 = int_to_ptr.vmem [resolvable:$true] %s1377_s27 }
 0x2e2   : > { %v913_v26 = vshrl.u32 %v912_v24, 7  ;;  %1727 = vmatpush3.bf16.msra.mxu1 %v1984_v23  ;;  %v904_v34 = vld [vmem:[#allocation2] sm:$0xff]  ;;  %v925_v40 = vld [vmem:[#allocation2 + $0x9] sm:$0xff]  ;;  %v981_v55 = vld [vmem:[#allocation2 + $0x18] sm:$0xff]  ;;  %s3576_s5 = sld [smem:[#allocation58_spill]]  ;;  %s3355_s18 = scalar_lea.sflag [#allocation5], %s547_s25 }
 0x2e3   : > { %1728 = vmatprep.subr.bf16.mxu1 %v1985_v25  ;;  %v924_v39 = vld [vmem:[#allocation2 + $0x1] sm:$0xff]  ;;  %v953_v45 = vld [vmem:[#allocation2 + $0xa] sm:$0xff]  ;;  %v3198_v57 = vld [vmem:[#allocation14 + $0x8] ss:$0 sm:$0xff]  ;;  %s2306_s8 = scalar_lea.vmem %s3348_s27, 1024  ;;  %s2496_s6 = smov [#allocation21]  }
 0x2e4   : > { %v914_v28 = vsub.s32 0, %v913_v26  ;;  %v934_v29 = vsub.s32 1, %v913_v26  ;;  %v962_v30 = vsub.s32 2, %v913_v26  ;;  %v991_v31 = vsub.s32 3, %v913_v26  ;;  %v952_v44 = vld [vmem:[#allocation2 + $0x2] sm:$0xff]  ;;  %v1009_v62 = vld [vmem:[#allocation2 + $0x19] sm:$0xff]  ;;  %p2307_p12 = scmp.ne.s32.totalorder %s3348_s27, %s2306_s8 }
 0x2e5   : > { %v1019_v35 = vsub.s32 4, %v913_v26  ;;  %v1047_v36 = vsub.s32 5, %v913_v26  ;;  %v1076_v48 = vsub.s32 6, %v913_v26  ;;  %v1104_v49 = vsub.s32 7, %v913_v26  ;;  %v1988_v50 = vld [vmem:[#allocation17 + $0x20] sm:$0xff]   ;;  %v1037_v4 = vld [vmem:[#allocation2 + $0x1a] sm:$0xff] }
 0x2e6   : > { %1729 = vmatpush3.bf16.msra.mxu1 %v1985_v25  ;;  %v3182_v38 = vrot.slane %v902_v33, %v914_v28  ;;  %v3184_v41 = vrot.slane %v902_v33, %v934_v29  ;;  %v3186_v42 = vrot.slane %v902_v33, %v962_v30  ;;  %v3188_v43 = vrot.slane %v902_v33, %v991_v31  ;;  %v982_v56 = vld [vmem:[#allocation2 + $0x20] sm:$0xff]  ;;  %v3208_v8 = vld [vmem:[#allocation2 + $0x30] sm:$0xff]  ;;  %v1067_v23 = vld [vmem:[#allocation2 + $0x38] sm:$0xff]  ;;  %s1671_s16 = sshll.u32 %s3573_s4, 3  ;;  %s1666_s17 = sshll.u32 %s3574_s0, 5 }
 0x2e7   : > { %1730 = vmatprep.subr.bf16.mxu1 %v1986_v27  ;;  %v3190_v46 = vrot.slane %v902_v33, %v1019_v35  ;;  %v3192_v47 = vrot.slane %v902_v33, %v1047_v36  ;;  %v1010_v63 = vld [vmem:[#allocation2 + $0x21] sm:$0xff]  ;;  %v3210_v9 = vrot.slane %v902_v33, %v1076_v48  ;;  %v3212_v10 = vrot.slane %v902_v33, %v1104_v49  ;;  %v3214_v11 = vld [vmem:[#allocation2 + $0x32] sm:$0xff]  ;;  %s1374_s2 = sadd.s32 %s1671_s16, %s1666_s17  ;;  %p3577_p11 = scmp.ne.s32.totalorder %s3575_s13, 0 }
 0x2e8   : > { %v916_v51 = vmul.f32 %v3182_v38, %v904_v34  ;;  %v917_v52 = vmul.f32 %v3182_v38, %v905_v37  ;;  %v936_v53 = vmul.f32 %v3184_v41, %v924_v39  ;;  %v937_v54 = vmul.f32 %v3184_v41, %v925_v40  ;;  %v1038_v5 = vld [vmem:[#allocation2 + $0x22] sm:$0xff]  ;;  %v3216_v16 = vld [vmem:[#allocation2 + $0x3a] sm:$0xff]  ;;  %v1094_v24 = vld [vmem:[#allocation2 + $0x31] sm:$0xff]  ;;  %s1667_s14 = sshll.u32 %s1374_s2, 7  ;;  %s2310_s15 = sshll.u32 %s2496_s6, 4  ;;  %s2311_s15 = int_to_ptr.vmem [resolvable:$false] %s2310_s15 }
 0x2e9   : > { %v964_v58 = vmul.f32 %v3186_v42, %v952_v44  ;;  %v965_v59 = vmul.f32 %v3186_v42, %v953_v45  ;;  %v993_v60 = vmul.f32 %v3188_v43, %v981_v55  ;;  %v994_v61 = vmul.f32 %v3188_v43, %v982_v56  ;;  %v1095_v25 = vld [vmem:[#allocation2 + $0x39] sm:$0xff]  ;;  %v1989_v28 = vld [vmem:[#allocation17 + $0x28] sm:$0xff]   ;;  %s3346_s7 = scalar_lea.hbm %s3576_s5, %s1667_s14  ;;  %p2308_p1 = pnand %p2307_p12, %p3577_p11 }
 0x2ea   : > { %1731 = vmatpush3.bf16.msra.mxu1 %v1986_v27  ;;  %v944_v0 = vadd.f32 %v936_v53, %v916_v51  ;;  %v945_v1 = vadd.f32 %v937_v54, %v917_v52  ;;  %v1021_v2 = vmul.f32 %v3190_v46, %v1009_v62  ;;  %v1022_v3 = vmul.f32 %v3190_v46, %v1010_v63  ;;  %v1990_v52 = vld [vmem:[#allocation17 + $0x30] sm:$0xff]   ;;  %s2312_s29 = scalar_lea.vmem %s2311_s15, 2048  ;;  %p2313_p9 = scmp.lt.s32.totalorder %s3348_s27, %s2311_s15 }
 0x2eb   : > { %1732 = vmatprep.subr.bf16.mxu1 %v1987_v32  ;;  %v1049_v6 = vmul.f32 %v3192_v47, %v1037_v4  ;;  %v1050_v7 = vmul.f32 %v3192_v47, %v1038_v5  ;;  %v1134_v26 = vmul.f32 %v3198_v57, %v3214_v11  ;;  %v1135_v27 = vmul.f32 %v3198_v57, %v3216_v16  ;;  %p2309_p2 = pneg %p2308_p1  ;;  %p2314_p0 = scmp.lt.s32.totalorder %s2312_s29, %s2306_s8 }
 0x2ec   : > { %v972_v17 = vadd.f32 %v964_v58, %v944_v0  ;;  %v973_v22 = vadd.f32 %v965_v59, %v945_v1  ;;  %v1078_v29 = vmul.f32 %v3210_v9, %v3208_v8  ;;  %v1079_v30 = vmul.f32 %v3210_v9, %v1067_v23 }
 0x2ed   : > { %v1106_v31 = vmul.f32 %v3212_v10, %v1094_v24  ;;  %v918_v35 = vmul.f32 %v981_v55, %v3182_v38  ;;  %v919_v36 = vmul.f32 %v982_v56, %v3182_v38  ;;  %v938_v37 = vmul.f32 %v1009_v62, %v3184_v41  ;;  %v3244_v62 = vld [vmem:[#allocation2 + $0x50] sm:$0xff]  ;;  %p2315_p3 = por %p2314_p0, %p2313_p9 }
 0x2ee   : > { %1733 = vmatpush3.bf16.msra.mxu1 %v1987_v32  ;;  %v1107_v32 = vmul.f32 %v3212_v10, %v1095_v25  ;;  %v1001_v33 = vadd.f32 %v993_v60, %v972_v17  ;;  %v1002_v34 = vadd.f32 %v994_v61, %v973_v22  ;;  %v939_v39 = vmul.f32 %v1010_v63, %v3184_v41  ;;  %v3242_v61 = vld [vmem:[#allocation2 + $0x48] sm:$0xff] }
 0x2ef   : > { %1734 = vmatprep.subr.bf16.mxu1 %v1988_v50  ;;  %v966_v40 = vmul.f32 %v1037_v4, %v3186_v42  ;;  %v967_v44 = vmul.f32 %v1038_v5, %v3186_v42  ;;  %v995_v49 = vmul.f32 %v3208_v8, %v3188_v43  ;;  %v996_v51 = vmul.f32 %v1067_v23, %v3188_v43  ;;  %v3252_v4 = vld [vmem:[#allocation2 + $0x51] sm:$0xff]  ;;  %p2316_p4 = pnand %p2315_p3, %p2309_p2 }
 0x2f0   : > { %v1029_v45 = vadd.f32 %v1021_v2, %v1001_v33  ;;  %v1030_v48 = vadd.f32 %v1022_v3, %v1002_v34  ;;  %v946_v53 = vadd.f32 %v938_v37, %v918_v35  ;;  %v947_v54 = vadd.f32 %v939_v39, %v919_v36  ;;  %v3250_v3 = vld [vmem:[#allocation2 + $0x49] sm:$0xff]  ;;  %v3260_v33 = vld [vmem:[#allocation2 + $0x52] sm:$0xff]  ;;  %v1991_v34 = vld [vmem:[#allocation17 + $0x38] sm:$0xff]  }
 0x2f1   : > { %v1023_v55 = vmul.f32 %v1094_v24, %v3190_v46  ;;  %v1024_v56 = vmul.f32 %v1095_v25, %v3190_v46  ;;  %v1052_v60 = vmul.f32 %v3216_v16, %v3192_v47  ;;  %v1080_v1 = vmul.f32 %v3210_v9, %v3242_v61  ;;  %v3258_v22 = vld [vmem:[#allocation2 + $0x4a] sm:$0xff] }
 0x2f2   : > { %1735 = vmatpush3.bf16.msra.mxu1 %v1988_v50  ;;  %v1057_v58 = vadd.f32 %v1049_v6, %v1029_v45  ;;  %v1058_v59 = vadd.f32 %v1050_v7, %v1030_v48  ;;  %v1051_v50 = vmul.f32 %v3214_v11, %v3192_v47  ;;  %v974_v63 = vadd.f32 %v966_v40, %v946_v53 }
 0x2f3   : > { %1736 = vmatprep.subr.bf16.mxu1 %v1989_v28  ;;  %v975_v0 = vadd.f32 %v967_v44, %v947_v54  ;;  %v1081_v2 = vmul.f32 %v3210_v9, %v3244_v62  ;;  %v1108_v7 = vmul.f32 %v3212_v10, %v3250_v3  ;;  %v1109_v17 = vmul.f32 %v3212_v10, %v3252_v4  ;;  %v3269_v44 = vld [vmem:[#allocation15] ss:$0 sm:$0xff] }
 0x2f4   : > { %v1086_v5 = vadd.f32 %v1078_v29, %v1057_v58  ;;  %v1087_v6 = vadd.f32 %v1079_v30, %v1058_v59  ;;  %v1003_v35 = vadd.f32 %v995_v49, %v974_v63  ;;  %v1136_v37 = vmul.f32 %v3198_v57, %v3258_v22 }
 0x2f5   : > { %v1004_v36 = vadd.f32 %v996_v51, %v975_v0  ;;  %v920_v39 = vmul.f32 %v3208_v8, %v3182_v38  ;;  %v921_v40 = vmul.f32 %v1067_v23, %v3182_v38  ;;  %v940_v49 = vmul.f32 %v1094_v24, %v3184_v41 }
 0x2f6   : > { %1737 = vmatpush3.bf16.msra.mxu1 %v1989_v28  ;;  %v1137_v28 = vmul.f32 %v3198_v57, %v3260_v33  ;;  %v1114_v29 = vadd.f32 %v1106_v31, %v1086_v5  ;;  %v1115_v30 = vadd.f32 %v1107_v32, %v1087_v6  ;;  %v1031_v45 = vadd.f32 %v1023_v55, %v1003_v35 }
 0x2f7   : > { %1738 = vmatprep.subr.bf16.mxu1 %v1990_v52  ;;  %v1032_v48 = vadd.f32 %v1024_v56, %v1004_v36  ;;  %v941_v51 = vmul.f32 %v1095_v25, %v3184_v41  ;;  %v968_v31 = vmul.f32 %v3214_v11, %v3186_v42  ;;  %v969_v32 = vmul.f32 %v3216_v16, %v3186_v42  ;;  %v1070_v36 = vld [vmem:[#allocation2 + $0x60] sm:$0xff] }
 0x2f8   : > { %v1142_v53 = vadd.f32 %v1134_v26, %v1114_v29  ;;  %v1143_v54 = vadd.f32 %v1135_v27, %v1115_v30  ;;  %v1059_v8 = vadd.f32 %v1051_v50, %v1031_v45  ;;  %v948_v58 = vadd.f32 %v940_v49, %v920_v39  ;;  %v1098_v49 = vld [vmem:[#allocation2 + $0x61] sm:$0xff] }
 0x2f9   : > { %v1060_v23 = vadd.f32 %v1052_v60, %v1032_v48  ;;  %v949_v59 = vadd.f32 %v941_v51, %v921_v40  ;;  %v997_v25 = vmul.f32 %v3242_v61, %v3188_v43  ;;  %v998_v26 = vmul.f32 %v3244_v62, %v3188_v43 }
 0x2fa   : > { %1739 = vmatpush3.bf16.msra.mxu1 %v1990_v52  ;;  %v1157_v55 = vadd.f32 %v3269_v44, %v1142_v53  ;;  %v1158_v24 = vadd.f32 %v3269_v44, %v1143_v54  ;;  %v1088_v27 = vadd.f32 %v1080_v1, %v1059_v8  ;;  %v976_v52 = vadd.f32 %v968_v31, %v948_v58 }
 0x2fb   : > { %1740 = vmatprep.subr.bf16.mxu1 %v1991_v34  ;;  %v1089_v11 = vadd.f32 %v1081_v2, %v1060_v23  ;;  %v977_v56 = vadd.f32 %v969_v32, %v949_v59  ;;  %v1025_v60 = vmul.f32 %v3250_v3, %v3190_v46  ;;  %v1026_v63 = vmul.f32 %v3252_v4, %v3190_v46  ;;  %v1127_v23 = vld [vmem:[#allocation2 + $0x6a] sm:$0xff] }
 0x2fc   : > { %v1165_v16 = vmax.f32 %v1157_v55, 0.0  ;;  %v1166_v50 = vmax.f32 %v1158_v24, 0.0  ;;  %v1116_v0 = vadd.f32 %v1108_v7, %v1088_v27  ;;  %v1005_v6 = vadd.f32 %v997_v25, %v976_v52  ;;  %v1099_v7 = vld [vmem:[#allocation2 + $0x69] sm:$0xff] }
 0x2fd   : > { %v1117_v5 = vadd.f32 %v1109_v17, %v1089_v11  ;;  %v1006_v35 = vadd.f32 %v998_v26, %v977_v56  ;;  %v1053_v1 = vmul.f32 %v3258_v22, %v3192_v47  ;;  %v1054_v2 = vmul.f32 %v3260_v33, %v3192_v47  ;;  %v1126_v17 = vld [vmem:[#allocation2 + $0x62] sm:$0xff] }
 0x2fe   : > { %1741 = vmatpush3.bf16.msra.mxu1 %v1991_v34  ;;  %v1173_v29 = vpack.c.bf16 %v1166_v50, %v1165_v16  ;;  %v1071_v34 = vld [vmem:[#allocation2 + $0x68] sm:$0xff]  ;;  %v1082_v30 = vmul.f32 %v3210_v9, %v1070_v36  ;;  %v1144_v39 = vadd.f32 %v1136_v37, %v1116_v0  ;;  %v1033_v45 = vadd.f32 %v1025_v60, %v1005_v6  ;;  %v1072_v6 = vld [vmem:[#allocation2 + $0x78] sm:$0xff] }
 0x2ff   : > { %v1145_v40 = vadd.f32 %v1137_v28, %v1117_v5  ;;  %v1034_v48 = vadd.f32 %v1026_v63, %v1006_v35  ;;  %v1083_v51 = vmul.f32 %v3210_v9, %v1071_v34  ;;  %v1110_v53 = vmul.f32 %v3212_v10, %v1098_v49 }
 0x300   : > { %1742 = vmatprep.mubr.bf16.mxu1 %v1173_v29  ;;  %v1111_v54 = vmul.f32 %v3212_v10, %v1099_v7  ;;  %v1138_v31 = vmul.f32 %v3198_v57, %v1126_v17  ;;  %v1159_v32 = vadd.f32 %v3269_v44, %v1144_v39  ;;  %v1061_v37 = vadd.f32 %v1053_v1, %v1033_v45  ;;  %v1073_v1 = vld [vmem:[#allocation2 + $0x80] sm:$0xff] }
 0x301   : > { %v1160_v8 = vadd.f32 %v3269_v44, %v1145_v40  ;;  %v1062_v28 = vadd.f32 %v1054_v2, %v1034_v48  ;;  %v1139_v58 = vmul.f32 %v3198_v57, %v1127_v23  ;;  %v922_v59 = vmul.f32 %v3242_v61, %v3182_v38  ;;  %v1100_v2 = vld [vmem:[#allocation2 + $0x79] sm:$0xff]  ;;  %v1101_v48 = vld [vmem:[#allocation2 + $0x81] sm:$0xff] }
 0x302   : > { %v923_v55 = vmul.f32 %v3244_v62, %v3182_v38  ;;  %v942_v24 = vmul.f32 %v3250_v3, %v3184_v41  ;;  %v1167_v25 = vmax.f32 %v1159_v32, 0.0  ;;  %v1090_v27 = vadd.f32 %v1082_v30, %v1061_v37 }
 0x303   : > { %v1168_v26 = vmax.f32 %v1160_v8, 0.0  ;;  %v1091_v11 = vadd.f32 %v1083_v51, %v1062_v28  ;;  %v943_v52 = vmul.f32 %v3252_v4, %v3184_v41  ;;  %v970_v16 = vmul.f32 %v3258_v22, %v3186_v42 }
 0x304   : > { %v950_v56 = vadd.f32 %v942_v24, %v922_v59  ;;  %v971_v61 = vmul.f32 %v3260_v33, %v3186_v42  ;;  %v1118_v60 = vadd.f32 %v1110_v53, %v1090_v27  ;;  %v999_v62 = vmul.f32 %v1070_v36, %v3188_v43 }
 0x305   : > { %v1174_v50 = vpack.c.bf16 %v1168_v26, %v1167_v25  ;;  %v1119_v38 = vadd.f32 %v1111_v54, %v1091_v11  ;;  %v951_v3 = vadd.f32 %v943_v52, %v923_v55  ;;  %v1000_v0 = vmul.f32 %v1071_v34, %v3188_v43  ;;  %v1129_v54 = vld [vmem:[#allocation2 + $0x82] sm:$0xff] }
 0x306   : > { %v978_v63 = vadd.f32 %v970_v16, %v950_v56  ;;  %v1027_v5 = vmul.f32 %v1098_v49, %v3190_v46  ;;  %v1146_v41 = vadd.f32 %v1138_v31, %v1118_v60  ;;  %v1028_v29 = vmul.f32 %v1099_v7, %v3190_v46  ;;  %v1128_v49 = vld [vmem:[#allocation2 + $0x7a] sm:$0xff]  ;;  %v1661_v11 = vld [vmem:[#allocation18] ss:$0 sm:$0xff]  ;;  %v1662_v52 = vld [vmem:[#allocation20] ss:$0 sm:$0xff] }
 0x307   : > { %1743 = vmatmul.mubr.bf16.vlgmr.msra.gmra.mrb[0].mxu1 %v1174_v50  ;;  %v1147_v4 = vadd.f32 %v1139_v58, %v1119_v38  ;;  %v979_v35 = vadd.f32 %v971_v61, %v951_v3  ;;  %v1055_v42 = vmul.f32 %v1126_v17, %v3192_v47  ;;  %v1056_v34 = vmul.f32 %v1127_v23, %v3192_v47 }
 0x308   : > { %v1007_v22 = vadd.f32 %v999_v62, %v978_v63  ;;  %v1161_v33 = vadd.f32 %v3269_v44, %v1146_v41  ;;  %v1084_v39 = vmul.f32 %v3210_v9, %v1072_v6  ;;  %v1085_v7 = vmul.f32 %v3210_v9, %v1073_v1 }
 0x309   : > { %v1162_v36 = vadd.f32 %v3269_v44, %v1147_v4  ;;  %v1008_v30 = vadd.f32 %v1000_v0, %v979_v35  ;;  %v1112_v17 = vmul.f32 %v3212_v10, %v1100_v2  ;;  %v1113_v8 = vmul.f32 %v3212_v10, %v1101_v48 }
 0x30a   : > { %v1035_v43 = vadd.f32 %v1027_v5, %v1007_v22  ;;  %v1169_v40 = vmax.f32 %v1161_v33, 0.0  ;;  %v1140_v47 = vmul.f32 %v3198_v57, %v1128_v49  ;;  %v1141_v23 = vmul.f32 %v3198_v57, %v1129_v54 }
 0x30b   : > { %v1170_v45 = vmax.f32 %v1162_v36, 0.0  ;;  %v1036_v51 = vadd.f32 %v1028_v29, %v1008_v30 }
 0x30c   : > { %v1063_v46 = vadd.f32 %v1055_v42, %v1035_v43 }
 0x30d   : > { %v1175_v53 = vpack.c.bf16 %v1170_v45, %v1169_v40  ;;  %v1064_v31 = vadd.f32 %v1056_v34, %v1036_v51 }
 0x30e   : > { %v1092_v32 = vadd.f32 %v1084_v39, %v1063_v46 }
 0x30f   : > { %1746 = vmatprep.mubr.bf16.mxu1 %v1175_v53  ;;  %v1093_v37 = vadd.f32 %v1085_v7, %v1064_v31 }
 0x310   : > { %v1120_v28 = vadd.f32 %v1112_v17, %v1092_v32 }
 0x311   : > { %v1121_v58 = vadd.f32 %v1113_v8, %v1093_v37 }
 0x312   : > { %v1148_v59 = vadd.f32 %v1140_v47, %v1120_v28 }
 0x313   : > { %v1149_v55 = vadd.f32 %v1141_v23, %v1121_v58 }
 0x314   : > { %v1163_v9 = vadd.f32 %v3269_v44, %v1148_v59 }
 0x315   : > { %v1164_v24 = vadd.f32 %v3269_v44, %v1149_v55 }
 0x316   : > { %v1171_v25 = vmax.f32 %v1163_v9, 0.0 }
 0x317   : > { %v1172_v26 = vmax.f32 %v1164_v24, 0.0 }
 0x319   : > { %v1176_v27 = vpack.c.bf16 %v1172_v26, %v1171_v25 }
 0x31b   : > { %1747 = vmatmul.mubr.bf16.gmra.mrb[4].mxu1 %v1176_v27 }
 0x3da   : > { %v1744_v10 = vpop.f32.mrb[0].mxu1 }
 0x3db   : > { %v1315_v56 = vmul.f32 %v1744_v10, %v1661_v11  ;;  %v1275_v16 = vpop.f32.mrb[1].mxu1 }
 0x3dc   : > { %v1313_v61 = vmul.f32 %v1661_v11, %v1275_v16  ;;  %v1745_v50 = vpop.f32.mrb[2].mxu1 }
 0x3dd   : > { %v1330_v57 = vadd.f32 %v1662_v52, %v1315_v56  ;;  %v1316_v60 = vmul.f32 %v1745_v50, %v1661_v11  ;;  %v1278_v38 = vpop.f32.mrb[3].mxu1 }
 0x3de   : > { %v1328_v62 = vadd.f32 %v1662_v52, %v1313_v61  ;;  %v1314_v44 = vmul.f32 %v1661_v11, %v1278_v38 }
 0x3df   : > { %v1338_v3 = vadd.f32 %v1330_v57, %v3148_v14  ;;  %v1331_v63 = vadd.f32 %v1662_v52, %v1316_v60 }
 0x3e0   : > { %v1336_v0 = vadd.f32 %v1328_v62, %v3142_v12  ;;  %v1329_v5 = vadd.f32 %v1662_v52, %v1314_v44 }
 0x3e1   : > { %v1346_v41 = vmax.f32 %v1338_v3, 0.0  ;;  %v1339_v4 = vadd.f32 %v1331_v63, %v3151_v15 }
 0x3e2   : > { %v1344_v6 = vmax.f32 %v1336_v0, 0.0  ;;  %v1337_v35 = vadd.f32 %v1329_v5, %v3145_v13 }
 0x3e3   : > { %1354 = vst [vmem:[%s3178_s12 + $0x10] sm:$0xff] %v1346_v41  ;;  %v1347_v22 = vmax.f32 %v1339_v4, 0.0 }
 0x3e4   : > { %1352 = vst [vmem:[%s3178_s12] sm:$0xff] %v1344_v6  ;;  %v1345_v29 = vmax.f32 %v1337_v35, 0.0 }
 0x3e5   : > { %1355 = vst [vmem:[%s3178_s12 + $0x18] sm:$0xff] %v1347_v22 }
 0x3e6   : > { %1353 = vst [vmem:[%s3178_s12 + $0x8] sm:$0xff] %v1345_v29 }
 0x3ee   : > { %v1748_v42 = vpop.f32.mrb[4].mxu1 }
 0x3ef   : > { %v1319_v14 = vmul.f32 %v1748_v42, %v1661_v11  ;;  %v1291_v33 = vpop.f32.mrb[5].mxu1 }
 0x3f0   : > { %v1317_v12 = vmul.f32 %v1661_v11, %v1291_v33  ;;  %v1749_v36 = vpop.f32.mrb[6].mxu1 }
 0x3f1   : > { %v1334_v1 = vadd.f32 %v1662_v52, %v1319_v14  ;;  %v1320_v15 = vmul.f32 %v1749_v36, %v1661_v11  ;;  %v1294_v2 = vpop.f32.mrb[7].mxu1 }
 0x3f2   : > { %v1332_v13 = vadd.f32 %v1662_v52, %v1317_v12  ;;  %v1318_v30 = vmul.f32 %v1661_v11, %v1294_v2 }
 0x3f3   : > { %v1342_v43 = vadd.f32 %v1334_v1, %v3164_v20  ;;  %v1335_v34 = vadd.f32 %v1662_v52, %v1320_v15 }
 0x3f4   : > { %v1340_v39 = vadd.f32 %v1332_v13, %v3158_v18  ;;  %v1333_v40 = vadd.f32 %v1662_v52, %v1318_v30 }
 0x3f5   : > { %v1350_v45 = vmax.f32 %v1342_v43, 0.0  ;;  %v1343_v48 = vadd.f32 %v1335_v34, %v3167_v21 }
 0x3f6   : > { %v1348_v49 = vmax.f32 %v1340_v39, 0.0  ;;  %v1341_v51 = vadd.f32 %v1333_v40, %v3161_v19 }
 0x3f7   : > { %1358 = vst [vmem:[%s3178_s12 + $0x30] sm:$0xff] %v1350_v45  ;;  %v1351_v46 = vmax.f32 %v1343_v48, 0.0 }
 0x3f8   : > { %1356 = vst [vmem:[%s3178_s12 + $0x20] sm:$0xff] %v1348_v49  ;;  %v1349_v18 = vmax.f32 %v1341_v51, 0.0 }
 0x3f9   : > { %1359 = vst [vmem:[%s3178_s12 + $0x38] sm:$0xff] %v1351_v46 }
 0x3fa   : > { %1357 = vst [vmem:[%s3178_s12 + $0x28] sm:$0xff] %v1349_v18 }
 0x3fb   : > { %2319 = shalt.err (!%p2316_p4)
}
 0x3fc   : > { %s2320_s25 = scalar_lea.hbm %s3346_s7, 1024  ;;  %s2324_s12 = scalar_lea.hbm %s3576_s5, 8192 }
 0x3fd   : > { %p2321_p5 = scmp.ne.s32.totalorder %s3346_s7, %s2320_s25  ;;  %p2325_p13 = scmp.lt.u32.totalorder %s3346_s7, %s3576_s5 }
 0x3fe   : > { %p2326_p6 = scmp.lt.u32.totalorder %s2324_s12, %s2320_s25  ;;  %p2328_p12 = scmp.lt.u32.totalorder %s2320_s25, %s3346_s7 }
 0x3ff   : > { %p2322_p7 = pnand %p2321_p5, %p3577_p11 }
 0x400   : > { %p2327_p8 = por %p2326_p6, %p2325_p13 }
 0x401   : > { %p2323_p10 = pneg %p2322_p7 }
 0x402   : > { %p2329_p1 = por %p2328_p12, %p2327_p8 }
 0x404   : > { %p2330_p2 = pnand %p2329_p1, %p2323_p10 }
 0x406   : > { %2333 = shalt.err (!%p2330_p2)
}
 0x407   : > { %s2497_s4 = smov 128   ;;  %s2498_s0 = smov 8  }
 0x408   : > { %1788 = dma.vmem_to_hbm [thread:$0]  (%p3577_p11), %s3348_s27, 1024, %s3346_s7, %s3355_s18, %s2497_s4, %s2497_s4, %s2498_s0  }
 0x409 PF: > { %s3578_s16 = sld [smem:[#allocation33_spill]]  ;;  %s3579_s17 = sld [smem:[#allocation45_spill]] }
 0x40a   : > { %p1846_p9 = scmp.ge.s32.totalorder %s2476_s30, 2 }
 0x40f   : > { %s1392_s2 = sand.u32 1, %s3578_s16   ;;  %p3580_p0 = scmp.ne.s32.totalorder %s3579_s17, 0 }
 0x410   : > { %s1393_s14 = scalar_lea.sflag [#allocation5], %s1392_s2 }
 0x411   : > { %p1826_p3 = pnand %p1846_p9, %p3580_p0 }
 0x413   : > { %2419 = dma.done.wait (!%p1826_p3), %s1393_s14, 1024  }
 0x414   : > { %2421 = vsyncadd (!%p1826_p3), %s1393_s14, 4294966272  ;;  %s34_s30 = sadd.s32 1, %s2476_s30   ;;  %s3582_s17 = sld [smem:[#allocation31_spill]] }
 0x415   : > { %p3384_p4 = scmp.ge.s32.totalorder %s34_s30, 10   ;;  %s3583_s18 = sld [smem:[#allocation32_spill]] }
 0x416   : > { %s3584_s23 = sld [smem:[#allocation35_spill]]  ;;  %s3585_s27 = sld [smem:[#allocation36_spill]] }
 0x417   : > { %s3586_s13 = smov %s2958_s20  ;;  %s3587_s26 = sld [smem:[#allocation39_spill]] }
 0x418   : > { %s3588_s7 = sld [smem:[#allocation40_spill]]  ;;  %s3589_s28 = sld [smem:[#allocation42_spill]] }
 0x419   : > { %s3590_s29 = sld [smem:[#allocation46_spill]]  ;;  %s3591_s19 = smov %s3613_s24 }
 0x41a   : > { %s3592_s20 = smov %s2440_s21  ;;  %s3593_s21 = smov %s2444_s22 }
 0x41b   : > { %s3594_s22 = smov %s2967_s9  ;;  %s3596_s25 = smov %s3586_s13 }
 0x41c   : > { %s3595_s24 = smov %s3585_s27  ;;  %33 = sbr.rel (!%p3384_p4) target bundleno = 29 (0x1d), region = 176 }
 0x41e   : > { %s3597_s27 = smov %s3588_s7 }
 0x423   :  { %1398 = vsyncpa [#allocation4], 1 }
 0x424   :  { %1400 = vsyncpa [#allocation4 + $0x1], 1 }
 0x425   :  { %1401 = vsyncpa [#allocation7], 1 }
 0x426   :  { %1403 = vsyncpa [#allocation7 + $0x1], 1 }
 0x427   :  { %1404 = vsyncpa [#allocation10], 1 }
 0x428   :  { %1405 = vsyncpa [#allocation13], 1 }
 0x429   :  { %1406 = vsyncpa [#allocation16], 1 }
 0x42a   :  { %1407 = vsyncpa [#allocation19], 1 }
 0x42b   :  { %1408 = vsyncpa [#allocation5], 1 }
 0x42c   :  { %1410 = vsyncpa [#allocation5 + $0x1], 1 }

</bundles_post_ra>
